<compile_context>
chip_gen: v7x
topology: tpu7x:2x2x1
jax: 0.10.0
libtpu: 0.0.40
codegen_flags: <defaults>
</compile_context>

<pallas_src>
import numpy as np
import jax
import jax.numpy as jnp
from jax.experimental import pallas as pl
from jax.experimental.pallas import tpu as pltpu

DIMENSION = 2   # particle dimension ("DIMENSION" global of the reference script)
HIDDEN = 8
BATCH = 8

# (name, in_features, out_features, has_bias) -- PyTorch layer inventory.
_PARAM_SPECS = [
    # EntropyNetwork
    ("S_in",     DIMENSION, HIDDEN, True),
    ("S_p1",     HIDDEN,    HIDDEN, True),
    ("S_l1",     DIMENSION, HIDDEN, True),
    ("S_p2",     HIDDEN,    HIDDEN, True),
    ("S_l2",     DIMENSION, HIDDEN, True),
    ("S_out",    HIDDEN,    1,      True),
    ("S_lout",   DIMENSION, 1,      True),
    # DissipationNetwork
    ("P_xin",    DIMENSION, HIDDEN, True),
    ("P_xp1",    HIDDEN,    HIDDEN, True),
    ("P_xp2",    HIDDEN,    HIDDEN, True),
    ("P_xl1",    DIMENSION, HIDDEN, True),
    ("P_xl2",    HIDDEN,    HIDDEN, True),
    ("P_xl3",    HIDDEN,    HIDDEN, True),
    ("P_xlout",  HIDDEN,    1,      True),
    ("P_cp1",    HIDDEN,    HIDDEN, False),
    ("P_cp2",    HIDDEN,    HIDDEN, False),
    ("P_cpout",  HIDDEN,    1,      False),
    ("P_cp1m",   HIDDEN,    HIDDEN, True),
    ("P_cp2m",   HIDDEN,    HIDDEN, True),
    ("P_cpoutm", HIDDEN,    HIDDEN, True),
    ("P_cli",    DIMENSION, HIDDEN, False),
    ("P_cl1",    DIMENSION, HIDDEN, False),
    ("P_cl2",    DIMENSION, HIDDEN, False),
    ("P_clout",  DIMENSION, 1,      False),
    ("P_clim",   DIMENSION, DIMENSION, True),
    ("P_cl1m",   HIDDEN,    DIMENSION, True),
    ("P_cl2m",   HIDDEN,    DIMENSION, True),
    ("P_cloutm", HIDDEN,    DIMENSION, True),
]

# ------------------- fused parameter layout (static) -------------------------
# Each fused block occupies its own 8-row slab of a single packed
# (_TOTAL_ROWS, 128) f32 buffer, so every in-kernel slice starts at an
# (8,128)-aligned corner (column offset 0, row offset a multiple of 8).
D, H = DIMENSION, HIDDEN
_X0_COLS = 5 * H + 1 + D           # 43: S_in|S_l1|S_l2|S_lout|P_xin|P_xl1|P_clim
_X1_COLS = 3 * H + D               # 26: P_cp1m|P_cl1m|P_xl2|P_xp1
_X3_COLS = H + D + 1               # 11: P_cpoutm|P_cloutm|P_xlout

_FUSED_SHAPES = [
    ("W_X0_R0", 1, _X0_COLS), ("W_X0_R1", 1, _X0_COLS), ("B_X0", 1, _X0_COLS),
    ("S_P1T",  H, H), ("S_P2T", H, H), ("S_OUT", 1, H), ("S_LOUT", 1, D),
    ("S_BW2",  H, H + D), ("S_BW1", H, H + D), ("S_IN", H, D),
    ("P_X1",   H, _X1_COLS), ("B_X1", 1, _X1_COLS),
    ("P_X2",   H, _X1_COLS), ("B_X2", 1, _X1_COLS),
    ("P_X3",   H, _X3_COLS), ("B_X3", 1, _X3_COLS),
    ("P_CP1T", H, H), ("P_CP2T", H, H), ("P_CPOUT", 1, H),
    ("P_CLIT_R0", 1, H), ("P_CLIT_R1", 1, H),
    ("P_CL1T_R0", 1, H), ("P_CL1T_R1", 1, H),
    ("P_CL2T_R0", 1, H), ("P_CL2T_R1", 1, H),
    ("P_CLOUT", 1, D),
    ("P_BW3",  H, H + D), ("P_BW2", H, H + D), ("P_CLI", H, D),
]
_LAYOUT = {}
_row = 0
for _n, _nr, _nc in _FUSED_SHAPES:
    _LAYOUT[_n] = (_row, _nr, _nc)
    _row += ((_nr + 7) // 8) * 8
_TOTAL_ROWS = _row          # 29 blocks * 8 rows = 232


# --------------------------- host-side param fusion --------------------------
def _build_fused(p):
    W = lambda n: np.asarray(p[n + "_W"], np.float32)        # (out, in)
    T = lambda n: np.asarray(p[n + "_W"], np.float32).T      # (in, out)
    Bv = lambda n: np.asarray(p[n + "_b"], np.float32)       # (1, out)
    cat = lambda arrs: np.concatenate(arrs, axis=1)

    # All x0-driven layers, transposed & concatenated along out-features.
    w_x0 = cat([T("S_in"), T("S_l1"), T("S_l2"), T("S_lout"),
                T("P_xin"), T("P_xl1"), T("P_clim")])                  # (2, 43)
    b_x0 = cat([Bv("S_in"),
                Bv("S_l1") + Bv("S_p1"),       # fold S_p1 bias into z2's x0 part
                Bv("S_l2") + Bv("S_p2"),
                Bv("S_lout") + Bv("S_out"),
                Bv("P_xin"), Bv("P_xl1"), Bv("P_clim")])               # (1, 43)
    p_clit = T("P_cli"); p_cl1t = T("P_cl1"); p_cl2t = T("P_cl2")      # (2, 8)

    return {
        "W_X0_R0": w_x0[0:1], "W_X0_R1": w_x0[1:2], "B_X0": b_x0,
        "S_P1T": T("S_p1"), "S_P2T": T("S_p2"),
        "S_OUT": W("S_out"), "S_LOUT": W("S_lout"),
        "S_BW2": cat([W("S_p2"), W("S_l2")]),                          # (8, 10)
        "S_BW1": cat([W("S_p1"), W("S_l1")]),                          # (8, 10)
        "S_IN": W("S_in"),                                             # (8, 2)
        "P_X1": cat([T("P_cp1m"), T("P_cl1m"), T("P_xl2"), T("P_xp1")]),   # (8, 26)
        "B_X1": cat([Bv("P_cp1m"), Bv("P_cl1m"), Bv("P_xl2"), Bv("P_xp1")]),
        "P_X2": cat([T("P_cp2m"), T("P_cl2m"), T("P_xl3"), T("P_xp2")]),
        "B_X2": cat([Bv("P_cp2m"), Bv("P_cl2m"), Bv("P_xl3"), Bv("P_xp2")]),
        "P_X3": cat([T("P_cpoutm"), T("P_cloutm"), T("P_xlout")]),     # (8, 11)
        "B_X3": cat([Bv("P_cpoutm"), Bv("P_cloutm"), Bv("P_xlout")]),
        "P_CP1T": T("P_cp1"), "P_CP2T": T("P_cp2"), "P_CPOUT": W("P_cpout"),
        "P_CLIT_R0": p_clit[0:1], "P_CLIT_R1": p_clit[1:2],
        "P_CL1T_R0": p_cl1t[0:1], "P_CL1T_R1": p_cl1t[1:2],
        "P_CL2T_R0": p_cl2t[0:1], "P_CL2T_R1": p_cl2t[1:2],
        "P_CLOUT": W("P_clout"),
        "P_BW3": cat([W("P_cp2"), W("P_cl2")]),                        # (8, 10)
        "P_BW2": cat([W("P_cp1"), W("P_cl1")]),                        # (8, 10)
        "P_CLI": W("P_cli"),                                           # (8, 2)
    }


def pack_params(pdict):
    """Pack every (fused) parameter into one tile-aligned (R, 128) f32 buffer."""
    fused = _build_fused(pdict)
    buf = np.zeros((_TOTAL_ROWS, 128), np.float32)
    for name, nr, nc in _FUSED_SHAPES:
        r, _, _ = _LAYOUT[name]
        a = np.asarray(fused[name], np.float32)
        assert a.shape == (nr, nc), (name, a.shape, (nr, nc))
        buf[r:r + nr, :nc] = a
    return jnp.asarray(buf)


# --------------------------------- kernel -----------------------------------
def _gradient_dynamics_kernel(x_ref, p_ref, out_ref):
    def ld(name):
        r, nr, nc = _LAYOUT[name]
        return p_ref[pl.ds(r, nr), pl.ds(0, nc)]

    def sp(z):                       # numerically-stable softplus
        return jnp.maximum(z, 0.0) + jnp.log(1.0 + jnp.exp(-jnp.abs(z)))

    def sp_sig(z):                   # softplus + sigmoid sharing one exp
        e = jnp.exp(-jnp.abs(z))
        soft = jnp.maximum(z, 0.0) + jnp.log(1.0 + e)
        sig = jnp.where(z >= 0.0, 1.0, e) / (1.0 + e)
        return soft, sig

    def sig(z):                      # sigmoid only (for the scalar heads)
        e = jnp.exp(-jnp.abs(z))
        return jnp.where(z >= 0.0, 1.0, e) / (1.0 + e)

    def k2(t, w0, w1):               # (B,2) @ (2,N) done on the VPU
        return t[:, 0:1] * w0 + t[:, 1:2] * w1

    def mm(a, w):                    # (B,K) @ (K,N) on the MXU, f32 accumulate
        return jnp.dot(a, w, preferred_element_type=jnp.float32)

    x0 = x_ref[...].astype(jnp.float32)                         # (B, 2)

    # ---- every x0-driven Linear of both networks, fused, on the VPU --------
    xprod = k2(x0, ld("W_X0_R0"), ld("W_X0_R1")) + ld("B_X0")    # (B, 43)
    z1    = xprod[:, 0:8]            # S_in(x0)
    z2x   = xprod[:, 8:16]           # S_l1(x0)   (+ S_p1 bias folded in)
    z3x   = xprod[:, 16:24]          # S_l2(x0)   (+ S_p2 bias)
    z4x   = xprod[:, 24:25]          # S_lout(x0) (+ S_out bias)
    x1pre = xprod[:, 25:33]          # P_xin(x0)
    u1x   = xprod[:, 33:41]          # P_xl1(x0)
    m_in  = xprod[:, 41:43]          # P_clim(x0)

    # ---------------- EntropyNetwork forward (h = -softplus(.)) -------------
    sp1, s1 = sp_sig(z1); h1 = -sp1
    z2 = mm(h1, ld("S_P1T")) + z2x
    sp2, s2 = sp_sig(z2); h2 = -sp2
    z3 = mm(h2, ld("S_P2T")) + z3x
    sp3, s3 = sp_sig(z3); h3 = -sp3
    s_out_w = ld("S_OUT")                                        # (1, 8)
    z4 = jnp.sum(h3 * s_out_w, axis=-1, keepdims=True) + z4x     # (B, 1)
    s4 = sig(z4)
    # S = -softplus(z4)  (only its gradient is needed)

    # ---------------- x_star = dS/dx  (seed = ones_like(S)) -----------------
    g4 = -s4                                                     # (B, 1)
    gh3 = g4 * s_out_w                                           # (B, 8)
    x_star = g4 * ld("S_LOUT")                                   # (B, 2)
    g3 = gh3 * (-s3)
    e2 = mm(g3, ld("S_BW2"))                                     # (B,10) = [gh2 | dx]
    x_star = x_star + e2[:, 8:10]
    g2 = e2[:, 0:8] * (-s2)
    e1 = mm(g2, ld("S_BW1"))                                     # (B,10) = [gh1 | dx]
    x_star = x_star + e1[:, 8:10]
    g1 = e1[:, 0:8] * (-s1)
    x_star = x_star + mm(g1, ld("S_IN"))                         # (B, 2)

    # ---------------- DissipationNetwork forward (PICNN) --------------------
    u1 = u1x + k2(x_star * m_in, ld("P_CLIT_R0"), ld("P_CLIT_R1"))
    xs1, su1 = sp_sig(u1)
    x1 = sp(x1pre)

    x1prod = mm(x1, ld("P_X1")) + ld("B_X1")                     # (B, 26)
    m1   = sp(x1prod[:, 0:8])
    lat1 = x1prod[:, 8:10]
    u2x  = x1prod[:, 10:18]
    x2   = sp(x1prod[:, 18:26])

    u2 = (u2x + mm(xs1 * m1, ld("P_CP1T"))
          + k2(x_star * lat1, ld("P_CL1T_R0"), ld("P_CL1T_R1")))
    xs2, su2 = sp_sig(u2)

    x2prod = mm(x2, ld("P_X2")) + ld("B_X2")                     # (B, 26)
    m2   = sp(x2prod[:, 0:8])
    lat2 = x2prod[:, 8:10]
    u3x  = x2prod[:, 10:18]
    x3   = sp(x2prod[:, 18:26])

    u3 = (u3x + mm(xs2 * m2, ld("P_CP2T"))
          + k2(x_star * lat2, ld("P_CL2T_R0"), ld("P_CL2T_R1")))
    xs3, su3 = sp_sig(u3)

    x3prod = mm(x3, ld("P_X3")) + ld("B_X3")                     # (B, 11)
    m3   = sp(x3prod[:, 0:8])
    lat3 = x3prod[:, 8:10]
    u4x  = x3prod[:, 10:11]

    cpout_w = ld("P_CPOUT")                                      # (1, 8)
    clout_w = ld("P_CLOUT")                                      # (1, 2)
    u4 = (u4x
          + jnp.sum((xs3 * m3) * cpout_w, axis=-1, keepdims=True)
          + jnp.sum((x_star * lat3) * clout_w, axis=-1, keepdims=True))
    su4 = sig(u4)
    # Psi = softplus(u4)  (only its gradient is needed)

    # -------- x_dot = dPsi/dx_star (x held fixed, seed = ones_like(Psi)) ----
    gxs3 = (su4 * cpout_w) * m3                                  # (B, 8)
    x_dot = (su4 * clout_w) * lat3                               # (B, 2)

    gu3 = gxs3 * su3
    d3 = mm(gu3, ld("P_BW3"))                                    # (B, 10)
    gxs2 = d3[:, 0:8] * m2
    x_dot = x_dot + d3[:, 8:10] * lat2

    gu2 = gxs2 * su2
    d2 = mm(gu2, ld("P_BW2"))                                    # (B, 10)
    gxs1 = d2[:, 0:8] * m1
    x_dot = x_dot + d2[:, 8:10] * lat1

    gu1 = gxs1 * su1
    x_dot = x_dot + mm(gu1, ld("P_CLI")) * m_in                  # (B, 2)

    out_ref[...] = x_dot.astype(out_ref.dtype)


# ------------------------------- wrapper -------------------------------------
@jax.jit
def gradient_dynamics(x, packed_params):
    # Single program, whole-array VMEM residency: 2 DMAs in, 1 out.
    return pl.pallas_call(
        _gradient_dynamics_kernel,
        out_shape=jax.ShapeDtypeStruct((x.shape[0], x.shape[1]), jnp.float32),
        in_specs=[pl.BlockSpec(memory_space=pltpu.MemorySpace.VMEM),
                  pl.BlockSpec(memory_space=pltpu.MemorySpace.VMEM)],
        out_specs=pl.BlockSpec(memory_space=pltpu.MemorySpace.VMEM),
    )(x, packed_params)


# ------------------------ deterministic param init ---------------------------
def init_params(key):
    """PyTorch-default-style init: U(-1/sqrt(fan_in), 1/sqrt(fan_in))."""
    pdict = {}
    keys = jax.random.split(key, len(_PARAM_SPECS))
    for (name, in_f, out_f, bias), k in zip(_PARAM_SPECS, keys):
        kw, kb = jax.random.split(k)
        bound = 1.0 / float(np.sqrt(in_f))
        pdict[name + "_W"] = jax.random.uniform(
            kw, (out_f, in_f), jnp.float32, -bound, bound)
        if bias:
            pdict[name + "_b"] = jax.random.uniform(
                kb, (1, out_f), jnp.float32, -bound, bound)
    return pdict


# --------------------- pure-JAX reference (for checking) ---------------------
def _s_fwd(x, p):
    sp = jax.nn.softplus
    h1 = -sp(x @ p["S_in_W"].T + p["S_in_b"])
    h2 = -sp(h1 @ p["S_p1_W"].T + p["S_p1_b"] + x @ p["S_l1_W"].T + p["S_l1_b"])
    h3 = -sp(h2 @ p["S_p2_W"].T + p["S_p2_b"] + x @ p["S_l2_W"].T + p["S_l2_b"])
    return -sp(h3 @ p["S_out_W"].T + p["S_out_b"]
               + x @ p["S_lout_W"].T + p["S_lout_b"])


def _psi_fwd(x0, xst, p):
    sp = jax.nn.softplus
    xs = sp(x0 @ p["P_xl1_W"].T + p["P_xl1_b"]
            + (xst * (x0 @ p["P_clim_W"].T + p["P_clim_b"])) @ p["P_cli_W"].T)
    xh = sp(x0 @ p["P_xin_W"].T + p["P_xin_b"])
    xs = sp(xh @ p["P_xl2_W"].T + p["P_xl2_b"]
            + (xs * sp(xh @ p["P_cp1m_W"].T + p["P_cp1m_b"])) @ p["P_cp1_W"].T
            + (xst * (xh @ p["P_cl1m_W"].T + p["P_cl1m_b"])) @ p["P_cl1_W"].T)
    xh = sp(xh @ p["P_xp1_W"].T + p["P_xp1_b"])
    xs = sp(xh @ p["P_xl3_W"].T + p["P_xl3_b"]
            + (xs * sp(xh @ p["P_cp2m_W"].T + p["P_cp2m_b"])) @ p["P_cp2_W"].T
            + (xst * (xh @ p["P_cl2m_W"].T + p["P_cl2m_b"])) @ p["P_cl2_W"].T)
    xh = sp(xh @ p["P_xp2_W"].T + p["P_xp2_b"])
    return sp(xh @ p["P_xlout_W"].T + p["P_xlout_b"]
              + (xs * sp(xh @ p["P_cpoutm_W"].T + p["P_cpoutm_b"])) @ p["P_cpout_W"].T
              + (xst * (xh @ p["P_cloutm_W"].T + p["P_cloutm_b"])) @ p["P_clout_W"].T)


if __name__ == "__main__":
    key = jax.random.PRNGKey(0)
    kx, kp = jax.random.split(key)
    pdict = init_params(kp)
    packed = pack_params(pdict)
    x = jax.random.normal(kx, (BATCH, DIMENSION), dtype=jnp.float32)

    x_dot = gradient_dynamics(x, packed)
    x_dot = jax.block_until_ready(x_dot)

    # Reference: same autograd semantics as torch.autograd.grad with ones seeds.
    x_star_ref = jax.grad(lambda xx: jnp.sum(_s_fwd(xx, pdict)))(x)
    x_dot_ref = jax.grad(lambda xs: jnp.sum(_psi_fwd(x, xs, pdict)))(x_star_ref)

    assert x_dot.shape == (BATCH, DIMENSION) and x_dot.dtype == jnp.float32
    np.testing.assert_allclose(np.asarray(x_dot), np.asarray(x_dot_ref),
                               rtol=1e-4, atol=1e-5)
    print("KERNEL_OK")
</pallas_src>

<mosaic_0001>
module attributes {stable_mosaic.version = 11 : i64} {
  func.func @_gradient_dynamics_kernel(%arg0: memref<8x2xf32, #tpu.memory_space<vmem>>, %arg1: memref<232x128xf32, #tpu.memory_space<vmem>>, %arg2: memref<8x2xf32, #tpu.memory_space<vmem>>) attributes {dimension_semantics = [], scalar_prefetch = 0 : i64, scratch_operands = 0 : i64, tpu.core_type = #tpu.core_type<tc>} {
    %c0 = arith.constant 0 : index
    %c0_0 = arith.constant 0 : index
    %0 = vector.load %arg0[%c0, %c0_0] : memref<8x2xf32, #tpu.memory_space<vmem>>, vector<8x2xf32>
    %c0_1 = arith.constant 0 : index
    %c0_2 = arith.constant 0 : index
    %1 = vector.load %arg1[%c0_1, %c0_2] : memref<232x128xf32, #tpu.memory_space<vmem>>, vector<1x43xf32>
    %c8 = arith.constant 8 : index
    %c0_3 = arith.constant 0 : index
    %2 = vector.load %arg1[%c8, %c0_3] : memref<232x128xf32, #tpu.memory_space<vmem>>, vector<1x43xf32>
    %3 = vector.extract_strided_slice %0 {offsets = [0, 0], sizes = [8, 1], strides = [1, 1]} : vector<8x2xf32> to vector<8x1xf32>
    %4 = vector.broadcast %3 : vector<8x1xf32> to vector<8x43xf32>
    %5 = vector.broadcast %1 : vector<1x43xf32> to vector<8x43xf32>
    %6 = arith.mulf %4, %5 : vector<8x43xf32>
    %7 = vector.extract_strided_slice %0 {offsets = [0, 1], sizes = [8, 1], strides = [1, 1]} : vector<8x2xf32> to vector<8x1xf32>
    %8 = vector.broadcast %7 : vector<8x1xf32> to vector<8x43xf32>
    %9 = vector.broadcast %2 : vector<1x43xf32> to vector<8x43xf32>
    %10 = arith.mulf %8, %9 : vector<8x43xf32>
    %11 = arith.addf %6, %10 : vector<8x43xf32>
    %c16 = arith.constant 16 : index
    %c0_4 = arith.constant 0 : index
    %12 = vector.load %arg1[%c16, %c0_4] : memref<232x128xf32, #tpu.memory_space<vmem>>, vector<1x43xf32>
    %13 = vector.broadcast %12 : vector<1x43xf32> to vector<8x43xf32>
    %14 = arith.addf %11, %13 : vector<8x43xf32>
    %15 = vector.extract_strided_slice %14 {offsets = [0, 0], sizes = [8, 8], strides = [1, 1]} : vector<8x43xf32> to vector<8x8xf32>
    %16 = vector.extract_strided_slice %14 {offsets = [0, 8], sizes = [8, 8], strides = [1, 1]} : vector<8x43xf32> to vector<8x8xf32>
    %17 = vector.extract_strided_slice %14 {offsets = [0, 16], sizes = [8, 8], strides = [1, 1]} : vector<8x43xf32> to vector<8x8xf32>
    %18 = vector.extract_strided_slice %14 {offsets = [0, 24], sizes = [8, 1], strides = [1, 1]} : vector<8x43xf32> to vector<8x1xf32>
    %19 = vector.extract_strided_slice %14 {offsets = [0, 25], sizes = [8, 8], strides = [1, 1]} : vector<8x43xf32> to vector<8x8xf32>
    %20 = vector.extract_strided_slice %14 {offsets = [0, 33], sizes = [8, 8], strides = [1, 1]} : vector<8x43xf32> to vector<8x8xf32>
    %21 = vector.extract_strided_slice %14 {offsets = [0, 41], sizes = [8, 2], strides = [1, 1]} : vector<8x43xf32> to vector<8x2xf32>
    %22 = math.absf %15 : vector<8x8xf32>
    %cst = arith.constant 0.000000e+00 : f32
    %23 = vector.broadcast %cst : f32 to vector<8x8xf32>
    %24 = arith.subf %23, %22 : vector<8x8xf32>
    %25 = math.exp %24 : vector<8x8xf32>
    %cst_5 = arith.constant 0.000000e+00 : f32
    %26 = vector.broadcast %cst_5 : f32 to vector<8x8xf32>
    %27 = arith.maximumf %15, %26 : vector<8x8xf32>
    %cst_6 = arith.constant 1.000000e+00 : f32
    %28 = vector.broadcast %cst_6 : f32 to vector<8x8xf32>
    %29 = arith.addf %28, %25 : vector<8x8xf32>
    %30 = math.log %29 : vector<8x8xf32>
    %31 = arith.addf %27, %30 : vector<8x8xf32>
    %cst_7 = arith.constant 0.000000e+00 : f32
    %32 = vector.broadcast %cst_7 : f32 to vector<8x8xf32>
    %33 = arith.cmpf oge, %15, %32 : vector<8x8xf32>
    %cst_8 = arith.constant 1.000000e+00 : f32
    %34 = vector.broadcast %cst_8 : f32 to vector<8x8xf32>
    %35 = arith.select %33, %34, %25 : vector<8x8xi1>, vector<8x8xf32>
    %cst_9 = arith.constant 1.000000e+00 : f32
    %36 = vector.broadcast %cst_9 : f32 to vector<8x8xf32>
    %37 = arith.addf %36, %25 : vector<8x8xf32>
    %38 = arith.divf %35, %37 : vector<8x8xf32>
    %cst_10 = arith.constant 0.000000e+00 : f32
    %39 = vector.broadcast %cst_10 : f32 to vector<8x8xf32>
    %40 = arith.subf %39, %31 : vector<8x8xf32>
    %c24 = arith.constant 24 : index
    %c0_11 = arith.constant 0 : index
    %41 = vector.load %arg1[%c24, %c0_11] : memref<232x128xf32, #tpu.memory_space<vmem>>, vector<8x8xf32>
    %cst_12 = arith.constant dense<0.000000e+00> : vector<8x8xf32>
    %42 = tpu.matmul %40, %41, %cst_12 {dimension_numbers = #tpu.dot_dimension_numbers<[1], [0], [0], [1], [0, 0, 1, 1], [], []>} : vector<8x8xf32>, vector<8x8xf32>, vector<8x8xf32> -> vector<8x8xf32>
    %43 = arith.addf %42, %16 : vector<8x8xf32>
    %44 = math.absf %43 : vector<8x8xf32>
    %cst_13 = arith.constant 0.000000e+00 : f32
    %45 = vector.broadcast %cst_13 : f32 to vector<8x8xf32>
    %46 = arith.subf %45, %44 : vector<8x8xf32>
    %47 = math.exp %46 : vector<8x8xf32>
    %cst_14 = arith.constant 0.000000e+00 : f32
    %48 = vector.broadcast %cst_14 : f32 to vector<8x8xf32>
    %49 = arith.maximumf %43, %48 : vector<8x8xf32>
    %cst_15 = arith.constant 1.000000e+00 : f32
    %50 = vector.broadcast %cst_15 : f32 to vector<8x8xf32>
    %51 = arith.addf %50, %47 : vector<8x8xf32>
    %52 = math.log %51 : vector<8x8xf32>
    %53 = arith.addf %49, %52 : vector<8x8xf32>
    %cst_16 = arith.constant 0.000000e+00 : f32
    %54 = vector.broadcast %cst_16 : f32 to vector<8x8xf32>
    %55 = arith.cmpf oge, %43, %54 : vector<8x8xf32>
    %cst_17 = arith.constant 1.000000e+00 : f32
    %56 = vector.broadcast %cst_17 : f32 to vector<8x8xf32>
    %57 = arith.select %55, %56, %47 : vector<8x8xi1>, vector<8x8xf32>
    %cst_18 = arith.constant 1.000000e+00 : f32
    %58 = vector.broadcast %cst_18 : f32 to vector<8x8xf32>
    %59 = arith.addf %58, %47 : vector<8x8xf32>
    %60 = arith.divf %57, %59 : vector<8x8xf32>
    %cst_19 = arith.constant 0.000000e+00 : f32
    %61 = vector.broadcast %cst_19 : f32 to vector<8x8xf32>
    %62 = arith.subf %61, %53 : vector<8x8xf32>
    %c32 = arith.constant 32 : index
    %c0_20 = arith.constant 0 : index
    %63 = vector.load %arg1[%c32, %c0_20] : memref<232x128xf32, #tpu.memory_space<vmem>>, vector<8x8xf32>
    %cst_21 = arith.constant dense<0.000000e+00> : vector<8x8xf32>
    %64 = tpu.matmul %62, %63, %cst_21 {dimension_numbers = #tpu.dot_dimension_numbers<[1], [0], [0], [1], [0, 0, 1, 1], [], []>} : vector<8x8xf32>, vector<8x8xf32>, vector<8x8xf32> -> vector<8x8xf32>
    %65 = arith.addf %64, %17 : vector<8x8xf32>
    %66 = math.absf %65 : vector<8x8xf32>
    %cst_22 = arith.constant 0.000000e+00 : f32
    %67 = vector.broadcast %cst_22 : f32 to vector<8x8xf32>
    %68 = arith.subf %67, %66 : vector<8x8xf32>
    %69 = math.exp %68 : vector<8x8xf32>
    %cst_23 = arith.constant 0.000000e+00 : f32
    %70 = vector.broadcast %cst_23 : f32 to vector<8x8xf32>
    %71 = arith.maximumf %65, %70 : vector<8x8xf32>
    %cst_24 = arith.constant 1.000000e+00 : f32
    %72 = vector.broadcast %cst_24 : f32 to vector<8x8xf32>
    %73 = arith.addf %72, %69 : vector<8x8xf32>
    %74 = math.log %73 : vector<8x8xf32>
    %75 = arith.addf %71, %74 : vector<8x8xf32>
    %cst_25 = arith.constant 0.000000e+00 : f32
    %76 = vector.broadcast %cst_25 : f32 to vector<8x8xf32>
    %77 = arith.cmpf oge, %65, %76 : vector<8x8xf32>
    %cst_26 = arith.constant 1.000000e+00 : f32
    %78 = vector.broadcast %cst_26 : f32 to vector<8x8xf32>
    %79 = arith.select %77, %78, %69 : vector<8x8xi1>, vector<8x8xf32>
    %cst_27 = arith.constant 1.000000e+00 : f32
    %80 = vector.broadcast %cst_27 : f32 to vector<8x8xf32>
    %81 = arith.addf %80, %69 : vector<8x8xf32>
    %82 = arith.divf %79, %81 : vector<8x8xf32>
    %cst_28 = arith.constant 0.000000e+00 : f32
    %83 = vector.broadcast %cst_28 : f32 to vector<8x8xf32>
    %84 = arith.subf %83, %75 : vector<8x8xf32>
    %c40 = arith.constant 40 : index
    %c0_29 = arith.constant 0 : index
    %85 = vector.load %arg1[%c40, %c0_29] : memref<232x128xf32, #tpu.memory_space<vmem>>, vector<1x8xf32>
    %86 = vector.broadcast %85 : vector<1x8xf32> to vector<8x8xf32>
    %87 = arith.mulf %84, %86 : vector<8x8xf32>
    %cst_30 = arith.constant dense<0.000000e+00> : vector<8xf32>
    %88 = vector.multi_reduction <add>, %87, %cst_30 [1] : vector<8x8xf32> to vector<8xf32>
    %89 = vector.shape_cast %88 : vector<8xf32> to vector<8x1xf32>
    %90 = arith.addf %89, %18 : vector<8x1xf32>
    %91 = math.absf %90 : vector<8x1xf32>
    %cst_31 = arith.constant 0.000000e+00 : f32
    %92 = vector.broadcast %cst_31 : f32 to vector<8x1xf32>
    %93 = arith.subf %92, %91 : vector<8x1xf32>
    %94 = math.exp %93 : vector<8x1xf32>
    %cst_32 = arith.constant 0.000000e+00 : f32
    %95 = vector.broadcast %cst_32 : f32 to vector<8x1xf32>
    %96 = arith.cmpf oge, %90, %95 : vector<8x1xf32>
    %cst_33 = arith.constant 1.000000e+00 : f32
    %97 = vector.broadcast %cst_33 : f32 to vector<8x1xf32>
    %98 = arith.select %96, %97, %94 : vector<8x1xi1>, vector<8x1xf32>
    %cst_34 = arith.constant 1.000000e+00 : f32
    %99 = vector.broadcast %cst_34 : f32 to vector<8x1xf32>
    %100 = arith.addf %99, %94 : vector<8x1xf32>
    %101 = arith.divf %98, %100 : vector<8x1xf32>
    %cst_35 = arith.constant 0.000000e+00 : f32
    %102 = vector.broadcast %cst_35 : f32 to vector<8x1xf32>
    %103 = arith.subf %102, %101 : vector<8x1xf32>
    %104 = vector.broadcast %103 : vector<8x1xf32> to vector<8x8xf32>
    %105 = vector.broadcast %85 : vector<1x8xf32> to vector<8x8xf32>
    %106 = arith.mulf %104, %105 : vector<8x8xf32>
    %c48 = arith.constant 48 : index
    %c0_36 = arith.constant 0 : index
    %107 = vector.load %arg1[%c48, %c0_36] : memref<232x128xf32, #tpu.memory_space<vmem>>, vector<1x2xf32>
    %108 = vector.broadcast %103 : vector<8x1xf32> to vector<8x2xf32>
    %109 = vector.broadcast %107 : vector<1x2xf32> to vector<8x2xf32>
    %110 = arith.mulf %108, %109 : vector<8x2xf32>
    %cst_37 = arith.constant 0.000000e+00 : f32
    %111 = vector.broadcast %cst_37 : f32 to vector<8x8xf32>
    %112 = arith.subf %111, %82 : vector<8x8xf32>
    %113 = arith.mulf %106, %112 : vector<8x8xf32>
    %c56 = arith.constant 56 : index
    %c0_38 = arith.constant 0 : index
    %114 = vector.load %arg1[%c56, %c0_38] : memref<232x128xf32, #tpu.memory_space<vmem>>, vector<8x10xf32>
    %cst_39 = arith.constant dense<0.000000e+00> : vector<8x10xf32>
    %115 = tpu.matmul %113, %114, %cst_39 {dimension_numbers = #tpu.dot_dimension_numbers<[1], [0], [0], [1], [0, 0, 1, 1], [], []>} : vector<8x8xf32>, vector<8x10xf32>, vector<8x10xf32> -> vector<8x10xf32>
    %116 = vector.extract_strided_slice %115 {offsets = [0, 8], sizes = [8, 2], strides = [1, 1]} : vector<8x10xf32> to vector<8x2xf32>
    %117 = arith.addf %110, %116 : vector<8x2xf32>
    %118 = vector.extract_strided_slice %115 {offsets = [0, 0], sizes = [8, 8], strides = [1, 1]} : vector<8x10xf32> to vector<8x8xf32>
    %cst_40 = arith.constant 0.000000e+00 : f32
    %119 = vector.broadcast %cst_40 : f32 to vector<8x8xf32>
    %120 = arith.subf %119, %60 : vector<8x8xf32>
    %121 = arith.mulf %118, %120 : vector<8x8xf32>
    %c64 = arith.constant 64 : index
    %c0_41 = arith.constant 0 : index
    %122 = vector.load %arg1[%c64, %c0_41] : memref<232x128xf32, #tpu.memory_space<vmem>>, vector<8x10xf32>
    %cst_42 = arith.constant dense<0.000000e+00> : vector<8x10xf32>
    %123 = tpu.matmul %121, %122, %cst_42 {dimension_numbers = #tpu.dot_dimension_numbers<[1], [0], [0], [1], [0, 0, 1, 1], [], []>} : vector<8x8xf32>, vector<8x10xf32>, vector<8x10xf32> -> vector<8x10xf32>
    %124 = vector.extract_strided_slice %123 {offsets = [0, 8], sizes = [8, 2], strides = [1, 1]} : vector<8x10xf32> to vector<8x2xf32>
    %125 = arith.addf %117, %124 : vector<8x2xf32>
    %126 = vector.extract_strided_slice %123 {offsets = [0, 0], sizes = [8, 8], strides = [1, 1]} : vector<8x10xf32> to vector<8x8xf32>
    %cst_43 = arith.constant 0.000000e+00 : f32
    %127 = vector.broadcast %cst_43 : f32 to vector<8x8xf32>
    %128 = arith.subf %127, %38 : vector<8x8xf32>
    %129 = arith.mulf %126, %128 : vector<8x8xf32>
    %c72 = arith.constant 72 : index
    %c0_44 = arith.constant 0 : index
    %130 = vector.load %arg1[%c72, %c0_44] : memref<232x128xf32, #tpu.memory_space<vmem>>, vector<8x2xf32>
    %cst_45 = arith.constant dense<0.000000e+00> : vector<8x2xf32>
    %131 = tpu.matmul %129, %130, %cst_45 {dimension_numbers = #tpu.dot_dimension_numbers<[1], [0], [0], [1], [0, 0, 1, 1], [], []>} : vector<8x8xf32>, vector<8x2xf32>, vector<8x2xf32> -> vector<8x2xf32>
    %132 = arith.addf %125, %131 : vector<8x2xf32>
    %133 = arith.mulf %132, %21 : vector<8x2xf32>
    %c152 = arith.constant 152 : index
    %c0_46 = arith.constant 0 : index
    %134 = vector.load %arg1[%c152, %c0_46] : memref<232x128xf32, #tpu.memory_space<vmem>>, vector<1x8xf32>
    %c160 = arith.constant 160 : index
    %c0_47 = arith.constant 0 : index
    %135 = vector.load %arg1[%c160, %c0_47] : memref<232x128xf32, #tpu.memory_space<vmem>>, vector<1x8xf32>
    %136 = vector.extract_strided_slice %133 {offsets = [0, 0], sizes = [8, 1], strides = [1, 1]} : vector<8x2xf32> to vector<8x1xf32>
    %137 = vector.broadcast %136 : vector<8x1xf32> to vector<8x8xf32>
    %138 = vector.broadcast %134 : vector<1x8xf32> to vector<8x8xf32>
    %139 = arith.mulf %137, %138 : vector<8x8xf32>
    %140 = vector.extract_strided_slice %133 {offsets = [0, 1], sizes = [8, 1], strides = [1, 1]} : vector<8x2xf32> to vector<8x1xf32>
    %141 = vector.broadcast %140 : vector<8x1xf32> to vector<8x8xf32>
    %142 = vector.broadcast %135 : vector<1x8xf32> to vector<8x8xf32>
    %143 = arith.mulf %141, %142 : vector<8x8xf32>
    %144 = arith.addf %139, %143 : vector<8x8xf32>
    %145 = arith.addf %20, %144 : vector<8x8xf32>
    %146 = math.absf %145 : vector<8x8xf32>
    %cst_48 = arith.constant 0.000000e+00 : f32
    %147 = vector.broadcast %cst_48 : f32 to vector<8x8xf32>
    %148 = arith.subf %147, %146 : vector<8x8xf32>
    %149 = math.exp %148 : vector<8x8xf32>
    %cst_49 = arith.constant 0.000000e+00 : f32
    %150 = vector.broadcast %cst_49 : f32 to vector<8x8xf32>
    %151 = arith.maximumf %145, %150 : vector<8x8xf32>
    %cst_50 = arith.constant 1.000000e+00 : f32
    %152 = vector.broadcast %cst_50 : f32 to vector<8x8xf32>
    %153 = arith.addf %152, %149 : vector<8x8xf32>
    %154 = math.log %153 : vector<8x8xf32>
    %155 = arith.addf %151, %154 : vector<8x8xf32>
    %cst_51 = arith.constant 0.000000e+00 : f32
    %156 = vector.broadcast %cst_51 : f32 to vector<8x8xf32>
    %157 = arith.cmpf oge, %145, %156 : vector<8x8xf32>
    %cst_52 = arith.constant 1.000000e+00 : f32
    %158 = vector.broadcast %cst_52 : f32 to vector<8x8xf32>
    %159 = arith.select %157, %158, %149 : vector<8x8xi1>, vector<8x8xf32>
    %cst_53 = arith.constant 1.000000e+00 : f32
    %160 = vector.broadcast %cst_53 : f32 to vector<8x8xf32>
    %161 = arith.addf %160, %149 : vector<8x8xf32>
    %162 = arith.divf %159, %161 : vector<8x8xf32>
    %cst_54 = arith.constant 0.000000e+00 : f32
    %163 = vector.broadcast %cst_54 : f32 to vector<8x8xf32>
    %164 = arith.maximumf %19, %163 : vector<8x8xf32>
    %165 = math.absf %19 : vector<8x8xf32>
    %cst_55 = arith.constant 0.000000e+00 : f32
    %166 = vector.broadcast %cst_55 : f32 to vector<8x8xf32>
    %167 = arith.subf %166, %165 : vector<8x8xf32>
    %168 = math.exp %167 : vector<8x8xf32>
    %cst_56 = arith.constant 1.000000e+00 : f32
    %169 = vector.broadcast %cst_56 : f32 to vector<8x8xf32>
    %170 = arith.addf %169, %168 : vector<8x8xf32>
    %171 = math.log %170 : vector<8x8xf32>
    %172 = arith.addf %164, %171 : vector<8x8xf32>
    %c80 = arith.constant 80 : index
    %c0_57 = arith.constant 0 : index
    %173 = vector.load %arg1[%c80, %c0_57] : memref<232x128xf32, #tpu.memory_space<vmem>>, vector<8x26xf32>
    %cst_58 = arith.constant dense<0.000000e+00> : vector<8x26xf32>
    %174 = tpu.matmul %172, %173, %cst_58 {dimension_numbers = #tpu.dot_dimension_numbers<[1], [0], [0], [1], [0, 0, 1, 1], [], []>} : vector<8x8xf32>, vector<8x26xf32>, vector<8x26xf32> -> vector<8x26xf32>
    %c88 = arith.constant 88 : index
    %c0_59 = arith.constant 0 : index
    %175 = vector.load %arg1[%c88, %c0_59] : memref<232x128xf32, #tpu.memory_space<vmem>>, vector<1x26xf32>
    %176 = vector.broadcast %175 : vector<1x26xf32> to vector<8x26xf32>
    %177 = arith.addf %174, %176 : vector<8x26xf32>
    %178 = vector.extract_strided_slice %177 {offsets = [0, 0], sizes = [8, 8], strides = [1, 1]} : vector<8x26xf32> to vector<8x8xf32>
    %cst_60 = arith.constant 0.000000e+00 : f32
    %179 = vector.broadcast %cst_60 : f32 to vector<8x8xf32>
    %180 = arith.maximumf %178, %179 : vector<8x8xf32>
    %181 = math.absf %178 : vector<8x8xf32>
    %cst_61 = arith.constant 0.000000e+00 : f32
    %182 = vector.broadcast %cst_61 : f32 to vector<8x8xf32>
    %183 = arith.subf %182, %181 : vector<8x8xf32>
    %184 = math.exp %183 : vector<8x8xf32>
    %cst_62 = arith.constant 1.000000e+00 : f32
    %185 = vector.broadcast %cst_62 : f32 to vector<8x8xf32>
    %186 = arith.addf %185, %184 : vector<8x8xf32>
    %187 = math.log %186 : vector<8x8xf32>
    %188 = arith.addf %180, %187 : vector<8x8xf32>
    %189 = vector.extract_strided_slice %177 {offsets = [0, 8], sizes = [8, 2], strides = [1, 1]} : vector<8x26xf32> to vector<8x2xf32>
    %190 = vector.extract_strided_slice %177 {offsets = [0, 10], sizes = [8, 8], strides = [1, 1]} : vector<8x26xf32> to vector<8x8xf32>
    %191 = vector.extract_strided_slice %177 {offsets = [0, 18], sizes = [8, 8], strides = [1, 1]} : vector<8x26xf32> to vector<8x8xf32>
    %cst_63 = arith.constant 0.000000e+00 : f32
    %192 = vector.broadcast %cst_63 : f32 to vector<8x8xf32>
    %193 = arith.maximumf %191, %192 : vector<8x8xf32>
    %194 = math.absf %191 : vector<8x8xf32>
    %cst_64 = arith.constant 0.000000e+00 : f32
    %195 = vector.broadcast %cst_64 : f32 to vector<8x8xf32>
    %196 = arith.subf %195, %194 : vector<8x8xf32>
    %197 = math.exp %196 : vector<8x8xf32>
    %cst_65 = arith.constant 1.000000e+00 : f32
    %198 = vector.broadcast %cst_65 : f32 to vector<8x8xf32>
    %199 = arith.addf %198, %197 : vector<8x8xf32>
    %200 = math.log %199 : vector<8x8xf32>
    %201 = arith.addf %193, %200 : vector<8x8xf32>
    %202 = arith.mulf %155, %188 : vector<8x8xf32>
    %c128 = arith.constant 128 : index
    %c0_66 = arith.constant 0 : index
    %203 = vector.load %arg1[%c128, %c0_66] : memref<232x128xf32, #tpu.memory_space<vmem>>, vector<8x8xf32>
    %cst_67 = arith.constant dense<0.000000e+00> : vector<8x8xf32>
    %204 = tpu.matmul %202, %203, %cst_67 {dimension_numbers = #tpu.dot_dimension_numbers<[1], [0], [0], [1], [0, 0, 1, 1], [], []>} : vector<8x8xf32>, vector<8x8xf32>, vector<8x8xf32> -> vector<8x8xf32>
    %205 = arith.addf %190, %204 : vector<8x8xf32>
    %206 = arith.mulf %132, %189 : vector<8x2xf32>
    %c168 = arith.constant 168 : index
    %c0_68 = arith.constant 0 : index
    %207 = vector.load %arg1[%c168, %c0_68] : memref<232x128xf32, #tpu.memory_space<vmem>>, vector<1x8xf32>
    %c176 = arith.constant 176 : index
    %c0_69 = arith.constant 0 : index
    %208 = vector.load %arg1[%c176, %c0_69] : memref<232x128xf32, #tpu.memory_space<vmem>>, vector<1x8xf32>
    %209 = vector.extract_strided_slice %206 {offsets = [0, 0], sizes = [8, 1], strides = [1, 1]} : vector<8x2xf32> to vector<8x1xf32>
    %210 = vector.broadcast %209 : vector<8x1xf32> to vector<8x8xf32>
    %211 = vector.broadcast %207 : vector<1x8xf32> to vector<8x8xf32>
    %212 = arith.mulf %210, %211 : vector<8x8xf32>
    %213 = vector.extract_strided_slice %206 {offsets = [0, 1], sizes = [8, 1], strides = [1, 1]} : vector<8x2xf32> to vector<8x1xf32>
    %214 = vector.broadcast %213 : vector<8x1xf32> to vector<8x8xf32>
    %215 = vector.broadcast %208 : vector<1x8xf32> to vector<8x8xf32>
    %216 = arith.mulf %214, %215 : vector<8x8xf32>
    %217 = arith.addf %212, %216 : vector<8x8xf32>
    %218 = arith.addf %205, %217 : vector<8x8xf32>
    %219 = math.absf %218 : vector<8x8xf32>
    %cst_70 = arith.constant 0.000000e+00 : f32
    %220 = vector.broadcast %cst_70 : f32 to vector<8x8xf32>
    %221 = arith.subf %220, %219 : vector<8x8xf32>
    %222 = math.exp %221 : vector<8x8xf32>
    %cst_71 = arith.constant 0.000000e+00 : f32
    %223 = vector.broadcast %cst_71 : f32 to vector<8x8xf32>
    %224 = arith.maximumf %218, %223 : vector<8x8xf32>
    %cst_72 = arith.constant 1.000000e+00 : f32
    %225 = vector.broadcast %cst_72 : f32 to vector<8x8xf32>
    %226 = arith.addf %225, %222 : vector<8x8xf32>
    %227 = math.log %226 : vector<8x8xf32>
    %228 = arith.addf %224, %227 : vector<8x8xf32>
    %cst_73 = arith.constant 0.000000e+00 : f32
    %229 = vector.broadcast %cst_73 : f32 to vector<8x8xf32>
    %230 = arith.cmpf oge, %218, %229 : vector<8x8xf32>
    %cst_74 = arith.constant 1.000000e+00 : f32
    %231 = vector.broadcast %cst_74 : f32 to vector<8x8xf32>
    %232 = arith.select %230, %231, %222 : vector<8x8xi1>, vector<8x8xf32>
    %cst_75 = arith.constant 1.000000e+00 : f32
    %233 = vector.broadcast %cst_75 : f32 to vector<8x8xf32>
    %234 = arith.addf %233, %222 : vector<8x8xf32>
    %235 = arith.divf %232, %234 : vector<8x8xf32>
    %c96 = arith.constant 96 : index
    %c0_76 = arith.constant 0 : index
    %236 = vector.load %arg1[%c96, %c0_76] : memref<232x128xf32, #tpu.memory_space<vmem>>, vector<8x26xf32>
    %cst_77 = arith.constant dense<0.000000e+00> : vector<8x26xf32>
    %237 = tpu.matmul %201, %236, %cst_77 {dimension_numbers = #tpu.dot_dimension_numbers<[1], [0], [0], [1], [0, 0, 1, 1], [], []>} : vector<8x8xf32>, vector<8x26xf32>, vector<8x26xf32> -> vector<8x26xf32>
    %c104 = arith.constant 104 : index
    %c0_78 = arith.constant 0 : index
    %238 = vector.load %arg1[%c104, %c0_78] : memref<232x128xf32, #tpu.memory_space<vmem>>, vector<1x26xf32>
    %239 = vector.broadcast %238 : vector<1x26xf32> to vector<8x26xf32>
    %240 = arith.addf %237, %239 : vector<8x26xf32>
    %241 = vector.extract_strided_slice %240 {offsets = [0, 0], sizes = [8, 8], strides = [1, 1]} : vector<8x26xf32> to vector<8x8xf32>
    %cst_79 = arith.constant 0.000000e+00 : f32
    %242 = vector.broadcast %cst_79 : f32 to vector<8x8xf32>
    %243 = arith.maximumf %241, %242 : vector<8x8xf32>
    %244 = math.absf %241 : vector<8x8xf32>
    %cst_80 = arith.constant 0.000000e+00 : f32
    %245 = vector.broadcast %cst_80 : f32 to vector<8x8xf32>
    %246 = arith.subf %245, %244 : vector<8x8xf32>
    %247 = math.exp %246 : vector<8x8xf32>
    %cst_81 = arith.constant 1.000000e+00 : f32
    %248 = vector.broadcast %cst_81 : f32 to vector<8x8xf32>
    %249 = arith.addf %248, %247 : vector<8x8xf32>
    %250 = math.log %249 : vector<8x8xf32>
    %251 = arith.addf %243, %250 : vector<8x8xf32>
    %252 = vector.extract_strided_slice %240 {offsets = [0, 8], sizes = [8, 2], strides = [1, 1]} : vector<8x26xf32> to vector<8x2xf32>
    %253 = vector.extract_strided_slice %240 {offsets = [0, 10], sizes = [8, 8], strides = [1, 1]} : vector<8x26xf32> to vector<8x8xf32>
    %254 = vector.extract_strided_slice %240 {offsets = [0, 18], sizes = [8, 8], strides = [1, 1]} : vector<8x26xf32> to vector<8x8xf32>
    %cst_82 = arith.constant 0.000000e+00 : f32
    %255 = vector.broadcast %cst_82 : f32 to vector<8x8xf32>
    %256 = arith.maximumf %254, %255 : vector<8x8xf32>
    %257 = math.absf %254 : vector<8x8xf32>
    %cst_83 = arith.constant 0.000000e+00 : f32
    %258 = vector.broadcast %cst_83 : f32 to vector<8x8xf32>
    %259 = arith.subf %258, %257 : vector<8x8xf32>
    %260 = math.exp %259 : vector<8x8xf32>
    %cst_84 = arith.constant 1.000000e+00 : f32
    %261 = vector.broadcast %cst_84 : f32 to vector<8x8xf32>
    %262 = arith.addf %261, %260 : vector<8x8xf32>
    %263 = math.log %262 : vector<8x8xf32>
    %264 = arith.addf %256, %263 : vector<8x8xf32>
    %265 = arith.mulf %228, %251 : vector<8x8xf32>
    %c136 = arith.constant 136 : index
    %c0_85 = arith.constant 0 : index
    %266 = vector.load %arg1[%c136, %c0_85] : memref<232x128xf32, #tpu.memory_space<vmem>>, vector<8x8xf32>
    %cst_86 = arith.constant dense<0.000000e+00> : vector<8x8xf32>
    %267 = tpu.matmul %265, %266, %cst_86 {dimension_numbers = #tpu.dot_dimension_numbers<[1], [0], [0], [1], [0, 0, 1, 1], [], []>} : vector<8x8xf32>, vector<8x8xf32>, vector<8x8xf32> -> vector<8x8xf32>
    %268 = arith.addf %253, %267 : vector<8x8xf32>
    %269 = arith.mulf %132, %252 : vector<8x2xf32>
    %c184 = arith.constant 184 : index
    %c0_87 = arith.constant 0 : index
    %270 = vector.load %arg1[%c184, %c0_87] : memref<232x128xf32, #tpu.memory_space<vmem>>, vector<1x8xf32>
    %c192 = arith.constant 192 : index
    %c0_88 = arith.constant 0 : index
    %271 = vector.load %arg1[%c192, %c0_88] : memref<232x128xf32, #tpu.memory_space<vmem>>, vector<1x8xf32>
    %272 = vector.extract_strided_slice %269 {offsets = [0, 0], sizes = [8, 1], strides = [1, 1]} : vector<8x2xf32> to vector<8x1xf32>
    %273 = vector.broadcast %272 : vector<8x1xf32> to vector<8x8xf32>
    %274 = vector.broadcast %270 : vector<1x8xf32> to vector<8x8xf32>
    %275 = arith.mulf %273, %274 : vector<8x8xf32>
    %276 = vector.extract_strided_slice %269 {offsets = [0, 1], sizes = [8, 1], strides = [1, 1]} : vector<8x2xf32> to vector<8x1xf32>
    %277 = vector.broadcast %276 : vector<8x1xf32> to vector<8x8xf32>
    %278 = vector.broadcast %271 : vector<1x8xf32> to vector<8x8xf32>
    %279 = arith.mulf %277, %278 : vector<8x8xf32>
    %280 = arith.addf %275, %279 : vector<8x8xf32>
    %281 = arith.addf %268, %280 : vector<8x8xf32>
    %282 = math.absf %281 : vector<8x8xf32>
    %cst_89 = arith.constant 0.000000e+00 : f32
    %283 = vector.broadcast %cst_89 : f32 to vector<8x8xf32>
    %284 = arith.subf %283, %282 : vector<8x8xf32>
    %285 = math.exp %284 : vector<8x8xf32>
    %cst_90 = arith.constant 0.000000e+00 : f32
    %286 = vector.broadcast %cst_90 : f32 to vector<8x8xf32>
    %287 = arith.maximumf %281, %286 : vector<8x8xf32>
    %cst_91 = arith.constant 1.000000e+00 : f32
    %288 = vector.broadcast %cst_91 : f32 to vector<8x8xf32>
    %289 = arith.addf %288, %285 : vector<8x8xf32>
    %290 = math.log %289 : vector<8x8xf32>
    %291 = arith.addf %287, %290 : vector<8x8xf32>
    %cst_92 = arith.constant 0.000000e+00 : f32
    %292 = vector.broadcast %cst_92 : f32 to vector<8x8xf32>
    %293 = arith.cmpf oge, %281, %292 : vector<8x8xf32>
    %cst_93 = arith.constant 1.000000e+00 : f32
    %294 = vector.broadcast %cst_93 : f32 to vector<8x8xf32>
    %295 = arith.select %293, %294, %285 : vector<8x8xi1>, vector<8x8xf32>
    %cst_94 = arith.constant 1.000000e+00 : f32
    %296 = vector.broadcast %cst_94 : f32 to vector<8x8xf32>
    %297 = arith.addf %296, %285 : vector<8x8xf32>
    %298 = arith.divf %295, %297 : vector<8x8xf32>
    %c112 = arith.constant 112 : index
    %c0_95 = arith.constant 0 : index
    %299 = vector.load %arg1[%c112, %c0_95] : memref<232x128xf32, #tpu.memory_space<vmem>>, vector<8x11xf32>
    %cst_96 = arith.constant dense<0.000000e+00> : vector<8x11xf32>
    %300 = tpu.matmul %264, %299, %cst_96 {dimension_numbers = #tpu.dot_dimension_numbers<[1], [0], [0], [1], [0, 0, 1, 1], [], []>} : vector<8x8xf32>, vector<8x11xf32>, vector<8x11xf32> -> vector<8x11xf32>
    %c120 = arith.constant 120 : index
    %c0_97 = arith.constant 0 : index
    %301 = vector.load %arg1[%c120, %c0_97] : memref<232x128xf32, #tpu.memory_space<vmem>>, vector<1x11xf32>
    %302 = vector.broadcast %301 : vector<1x11xf32> to vector<8x11xf32>
    %303 = arith.addf %300, %302 : vector<8x11xf32>
    %304 = vector.extract_strided_slice %303 {offsets = [0, 0], sizes = [8, 8], strides = [1, 1]} : vector<8x11xf32> to vector<8x8xf32>
    %cst_98 = arith.constant 0.000000e+00 : f32
    %305 = vector.broadcast %cst_98 : f32 to vector<8x8xf32>
    %306 = arith.maximumf %304, %305 : vector<8x8xf32>
    %307 = math.absf %304 : vector<8x8xf32>
    %cst_99 = arith.constant 0.000000e+00 : f32
    %308 = vector.broadcast %cst_99 : f32 to vector<8x8xf32>
    %309 = arith.subf %308, %307 : vector<8x8xf32>
    %310 = math.exp %309 : vector<8x8xf32>
    %cst_100 = arith.constant 1.000000e+00 : f32
    %311 = vector.broadcast %cst_100 : f32 to vector<8x8xf32>
    %312 = arith.addf %311, %310 : vector<8x8xf32>
    %313 = math.log %312 : vector<8x8xf32>
    %314 = arith.addf %306, %313 : vector<8x8xf32>
    %315 = vector.extract_strided_slice %303 {offsets = [0, 8], sizes = [8, 2], strides = [1, 1]} : vector<8x11xf32> to vector<8x2xf32>
    %316 = vector.extract_strided_slice %303 {offsets = [0, 10], sizes = [8, 1], strides = [1, 1]} : vector<8x11xf32> to vector<8x1xf32>
    %c144 = arith.constant 144 : index
    %c0_101 = arith.constant 0 : index
    %317 = vector.load %arg1[%c144, %c0_101] : memref<232x128xf32, #tpu.memory_space<vmem>>, vector<1x8xf32>
    %c200 = arith.constant 200 : index
    %c0_102 = arith.constant 0 : index
    %318 = vector.load %arg1[%c200, %c0_102] : memref<232x128xf32, #tpu.memory_space<vmem>>, vector<1x2xf32>
    %319 = arith.mulf %291, %314 : vector<8x8xf32>
    %320 = vector.broadcast %317 : vector<1x8xf32> to vector<8x8xf32>
    %321 = arith.mulf %319, %320 : vector<8x8xf32>
    %cst_103 = arith.constant dense<0.000000e+00> : vector<8xf32>
    %322 = vector.multi_reduction <add>, %321, %cst_103 [1] : vector<8x8xf32> to vector<8xf32>
    %323 = vector.shape_cast %322 : vector<8xf32> to vector<8x1xf32>
    %324 = arith.addf %316, %323 : vector<8x1xf32>
    %325 = arith.mulf %132, %315 : vector<8x2xf32>
    %326 = vector.broadcast %318 : vector<1x2xf32> to vector<8x2xf32>
    %327 = arith.mulf %325, %326 : vector<8x2xf32>
    %cst_104 = arith.constant dense<0.000000e+00> : vector<8xf32>
    %328 = vector.multi_reduction <add>, %327, %cst_104 [1] : vector<8x2xf32> to vector<8xf32>
    %329 = vector.shape_cast %328 : vector<8xf32> to vector<8x1xf32>
    %330 = arith.addf %324, %329 : vector<8x1xf32>
    %331 = math.absf %330 : vector<8x1xf32>
    %cst_105 = arith.constant 0.000000e+00 : f32
    %332 = vector.broadcast %cst_105 : f32 to vector<8x1xf32>
    %333 = arith.subf %332, %331 : vector<8x1xf32>
    %334 = math.exp %333 : vector<8x1xf32>
    %cst_106 = arith.constant 0.000000e+00 : f32
    %335 = vector.broadcast %cst_106 : f32 to vector<8x1xf32>
    %336 = arith.cmpf oge, %330, %335 : vector<8x1xf32>
    %cst_107 = arith.constant 1.000000e+00 : f32
    %337 = vector.broadcast %cst_107 : f32 to vector<8x1xf32>
    %338 = arith.select %336, %337, %334 : vector<8x1xi1>, vector<8x1xf32>
    %cst_108 = arith.constant 1.000000e+00 : f32
    %339 = vector.broadcast %cst_108 : f32 to vector<8x1xf32>
    %340 = arith.addf %339, %334 : vector<8x1xf32>
    %341 = arith.divf %338, %340 : vector<8x1xf32>
    %342 = vector.broadcast %341 : vector<8x1xf32> to vector<8x8xf32>
    %343 = vector.broadcast %317 : vector<1x8xf32> to vector<8x8xf32>
    %344 = arith.mulf %342, %343 : vector<8x8xf32>
    %345 = arith.mulf %344, %314 : vector<8x8xf32>
    %346 = vector.broadcast %341 : vector<8x1xf32> to vector<8x2xf32>
    %347 = vector.broadcast %318 : vector<1x2xf32> to vector<8x2xf32>
    %348 = arith.mulf %346, %347 : vector<8x2xf32>
    %349 = arith.mulf %348, %315 : vector<8x2xf32>
    %350 = arith.mulf %345, %298 : vector<8x8xf32>
    %c208 = arith.constant 208 : index
    %c0_109 = arith.constant 0 : index
    %351 = vector.load %arg1[%c208, %c0_109] : memref<232x128xf32, #tpu.memory_space<vmem>>, vector<8x10xf32>
    %cst_110 = arith.constant dense<0.000000e+00> : vector<8x10xf32>
    %352 = tpu.matmul %350, %351, %cst_110 {dimension_numbers = #tpu.dot_dimension_numbers<[1], [0], [0], [1], [0, 0, 1, 1], [], []>} : vector<8x8xf32>, vector<8x10xf32>, vector<8x10xf32> -> vector<8x10xf32>
    %353 = vector.extract_strided_slice %352 {offsets = [0, 0], sizes = [8, 8], strides = [1, 1]} : vector<8x10xf32> to vector<8x8xf32>
    %354 = arith.mulf %353, %251 : vector<8x8xf32>
    %355 = vector.extract_strided_slice %352 {offsets = [0, 8], sizes = [8, 2], strides = [1, 1]} : vector<8x10xf32> to vector<8x2xf32>
    %356 = arith.mulf %355, %252 : vector<8x2xf32>
    %357 = arith.addf %349, %356 : vector<8x2xf32>
    %358 = arith.mulf %354, %235 : vector<8x8xf32>
    %c216 = arith.constant 216 : index
    %c0_111 = arith.constant 0 : index
    %359 = vector.load %arg1[%c216, %c0_111] : memref<232x128xf32, #tpu.memory_space<vmem>>, vector<8x10xf32>
    %cst_112 = arith.constant dense<0.000000e+00> : vector<8x10xf32>
    %360 = tpu.matmul %358, %359, %cst_112 {dimension_numbers = #tpu.dot_dimension_numbers<[1], [0], [0], [1], [0, 0, 1, 1], [], []>} : vector<8x8xf32>, vector<8x10xf32>, vector<8x10xf32> -> vector<8x10xf32>
    %361 = vector.extract_strided_slice %360 {offsets = [0, 0], sizes = [8, 8], strides = [1, 1]} : vector<8x10xf32> to vector<8x8xf32>
    %362 = arith.mulf %361, %188 : vector<8x8xf32>
    %363 = vector.extract_strided_slice %360 {offsets = [0, 8], sizes = [8, 2], strides = [1, 1]} : vector<8x10xf32> to vector<8x2xf32>
    %364 = arith.mulf %363, %189 : vector<8x2xf32>
    %365 = arith.addf %357, %364 : vector<8x2xf32>
    %366 = arith.mulf %362, %162 : vector<8x8xf32>
    %c224 = arith.constant 224 : index
    %c0_113 = arith.constant 0 : index
    %367 = vector.load %arg1[%c224, %c0_113] : memref<232x128xf32, #tpu.memory_space<vmem>>, vector<8x2xf32>
    %cst_114 = arith.constant dense<0.000000e+00> : vector<8x2xf32>
    %368 = tpu.matmul %366, %367, %cst_114 {dimension_numbers = #tpu.dot_dimension_numbers<[1], [0], [0], [1], [0, 0, 1, 1], [], []>} : vector<8x8xf32>, vector<8x2xf32>, vector<8x2xf32> -> vector<8x2xf32>
    %369 = arith.mulf %368, %21 : vector<8x2xf32>
    %370 = arith.addf %365, %369 : vector<8x2xf32>
    %c0_115 = arith.constant 0 : index
    %c0_116 = arith.constant 0 : index
    %371 = vector.load %arg2[%c0_115, %c0_116] : memref<8x2xf32, #tpu.memory_space<vmem>>, vector<8x2xf32>
    tpu.vector_store %arg2[%c0_115, %c0_116], %370 {strides = array<i32>} : memref<8x2xf32, #tpu.memory_space<vmem>>, vector<8x2xf32>,
    return
  }
}

</mosaic_0001>

<bundles_post_ra>
// kernel: gradient_dynamics.1
= control target key start
LH: loop header
LB: loop body
LE: loop exit
PB: predicated region body
PF: predicated region fallthrough
CT: control target
= control target key end

     0   :  { %7 = vsyncpa [#allocation3], 0  ;;  %s1641_s9 = smov [#allocation2]   ;;  %s1853_s0 = inlined_call_operand.vmem [shape: f32[8,2], index: 0, kind: input, shape index: {}]   ;;  %s1854_s1 = inlined_call_operand.hbm [shape: f32[232,128], index: 1, kind: input, shape index: {}]   ;;  %s1855_s2 = inlined_call_operand.vmem [shape: f32[8,2], index: 2, kind: output, shape index: {}]  }
   0x1   :  { %s15_s10 = sshll.u32 %s1641_s9, 4  ;;  %s1617_s13 = scalar_lea.hbm %s1854_s1, 3712  ;;  %s16_s10 = int_to_ptr.vmem [resolvable:$true] %s15_s10 }
   0x2   :  { %p1618_p0 = scmp.ne.s32.totalorder %s1854_s1, %s1617_s13  ;;  %p1621_p1 = scmp.lt.u32.totalorder %s1617_s13, %s1854_s1 }
   0x4   :  { %p1623_p2 = pnand %p1621_p1, %p1618_p0 }
   0x6   :  { %1626 = shalt.err (!%p1623_p2)
}
   0x7   :  { %s1627_s18 = scalar_lea.vmem %s16_s10, 3712  ;;  %p1632_p4 = scmp.lt.s32.totalorder %s16_s10, %s16_s10 }
   0x8   :  { %p1628_p3 = scmp.ne.s32.totalorder %s16_s10, %s1627_s18  ;;  %p1633_p5 = scmp.lt.s32.totalorder %s1627_s18, %s1627_s18 }
   0xa   :  { %p1634_p6 = por %p1633_p5, %p1632_p4 }
   0xc   :  { %p1635_p7 = pnand %p1634_p6, %p1628_p3 }
   0xe   :  { %1638 = shalt.err (!%p1635_p7)
}
   0xf   :  { %s1642_s19 = smov 128   ;;  %s1643_s20 = smov 8  }
  0x10   :  { %21 = dma.hbm_to_vmem [thread:$0]  %s1854_s1, 3712, %s16_s10, [#allocation3], %s1642_s19, %s1642_s19, %s1643_s20  }
  0x11   :  { %1639 = dma.done.wait [#allocation3], 3712  }
  0x12   :  { %1640 = vsyncadd [#allocation3], 4294963584  ;;  %v1644_v0 = vmov 0   ;;  %v1645_v1 = vmov 1   ;;  %v25_v2 = vld [vmem:[%s1853_s0] sm:$0xff]  ;;  %v68_v3 = vld [vmem:[#allocation2 + $0x18] sm:$0xff] }
  0x13   :  { %1551 = vset.pattern.permute.xlu0 %v1644_v0  ;;  %1557 = vset.pattern.permute.xlu1 %v1645_v1  ;;  %v1646_v4 = vmov 0.0   ;;  %vm1647_vm0 = vmmov 0   ;;  %v1413_v6 = vld [vmem:[#allocation2] ss:$0 sm:$0xff]  ;;  %v1414_v7 = vld [vmem:[#allocation2 + $0x8] ss:$0 sm:$0xff] }
  0x14   :  { %30 = vperm.xlu0 %1551, %v25_v2   ;;  %1468 = vmatprep.subr.mxu0 %v1646_v4  ;;  %v1415_v11 = vld [vmem:[#allocation2 + $0x10] ss:$0 sm:$0xff]  ;;  %s1648_s0 = smov 120   ;;  %s1649_s1 = smov 112   ;;  %vm73_vm2 = vcmask 64512   ;;  %v161_v27 = vld [vmem:[#allocation2 + $0x20] sm:$0xff] }
  0x15   :  { %1470 = vmatprep.mubr.msk.f32.mxu0 %vm1647_vm0, %v1646_v4  ;;  %1469 = vmatpush3.msra.mxu0 %v68_v3  ;;  %v1418_v61 = vld [vmem:[#allocation2 + $0x28] ss:$0 sm:$0xff]  ;;  %v1650_v3 = vmov 24   ;;  %s1651_s25 = smov 103   ;;  %s1652_s26 = smov 87   ;;  %vm1131_vm9 = vcmask 15360  }
  0x16   :  { %1473 = vmatprep.subr.mxu1 %v1646_v4  ;;  %1475 = vmatprep.mubr.msk.f32.mxu1 %vm1647_vm0, %v1646_v4  ;;  %s1653_s27 = smov 33   ;;  %s1654_s28 = smov 95  }
  0x17   :  { %1478 = vmatprep.subr.mxu0 %v1646_v4  ;;  %1474 = vmatpush3.msra.mxu1 %v161_v27  ;;  %s1655_s29 = smov 110   ;;  %s1656_s30 = smov 10  }
  0x18   :  { %1552 = vset.pattern.permute.xlu0 %v1645_v1  ;;  %1483 = vmatprep.subr.mxu1 %v1646_v4  ;;  %s1657_s3 = smov 118  }
  0x19   :  { %39 = vperm.xlu0 %1552, %v25_v2  }
  0x1d   :  { %1553 = vset.pattern.permute.xlu0 %v1650_v3 }
  0x93   :  { %v31_v5 = vpop.permute.xlu0 %30 }
  0x94   :  { %v37_v9 = vmul.f32 %v1413_v6, %v31_v5 }
  0x98   :  { %v40_v8 = vpop.permute.xlu0 %39 }
  0x99   :  { %v46_v10 = vmul.f32 %v1414_v7, %v40_v8 }
  0x9b   :  { %v47_v12 = vadd.f32 %v46_v10, %v37_v9 }
  0x9d   :  { %v1699_v13 = vadd.f32 %v1415_v11, %v47_v12 }
  0x9f   :  { %70 = vrot.lane.b32.xlu1 %v1699_v13, %s1648_s0  ;;  %v54_v14 = vand.u32 2147483647, %v1699_v13  ;;  %vm63_vm1 = vcmp.ge.f32.partialorder %v1699_v13, 0.0  ;;  %v58_v21 = vmax.f32 %v1699_v13, 0.0 }
  0xa1   :  { %v55_v15 = vsub.f32 0.0, %v54_v14 }
  0xa3   :  { %162 = vrot.lane.b32.xlu1 %v1699_v13, %s1649_s1  ;;  %v56_v16 = vmul.f32 1.442695, %v55_v15 }
  0xa5   :  { %1561 = vpow2.f32 %v56_v16 }
  0xaf   :  { %v1562_v17 = vpop.eup %1561 }
  0xb0   :  { %v59_v18 = vadd.f32 1.0, %v1562_v17  ;;  %v64_v23 = vsel %vm63_vm1, 1.0, %v1562_v17  ;;  %v286_v17 = vld [vmem:[#allocation2 + $0x38] sm:$0xff] }
  0xb2   :  { %1563 = vlog2.f32 %v59_v18 }
  0xb3   :  { %1565 = vrcp.f32 %v59_v18  ;;  %v367_v18 = vld [vmem:[#allocation2 + $0x40] sm:$0xff] }
  0xbc   :  { %v1564_v19 = vpop.eup %1563 }
  0xbd   :  { %v1566_v20 = vpop.eup %1565  ;;  %v61_v22 = vmul.f32 0.6931472, %v1564_v19 }
  0xbe   :  { %v1707_v24 = vmul.f32 %v1566_v20, %v64_v23  ;;  %v448_v23 = vld [vmem:[#allocation2 + $0x48] sm:$0xff] }
  0xbf   :  { %v1709_v25 = vadd.f32 %v61_v22, %v58_v21 }
  0xc1   :  { %v67_v26 = vsub.f32 0.0, %v1709_v25 }
  0xc3   :  { %1471 = vmatmul.mubr.msk.f32.vlgmr.msra.gmra.mrb[0].mxu0 %vm73_vm2, %v67_v26 }
  0xc4   :  { %1480 = vmatprep.mubr.msk.f32.mxu0 %vm1647_vm0, %v1646_v4  ;;  %1479 = vmatpush3.msra.mxu0 %v286_v17 }
  0xc5   :  { %1488 = vmatprep.subr.mxu0 %v1646_v4 }
 0x111   :  { %v71_v28 = vpop.permute.xlu1 %70 }
 0x115   :  { %v163_v45 = vpop.permute.xlu1 %162 }
 0x196   :  { %v143_v29 = vpop.f32.mrb[0].mxu0 }
 0x197   :  { %v144_v30 = vadd.f32 %v143_v29, %v71_v28  ;;  %v1472_v31 = vpop.f32.mrb[1].mxu0  ;;  %v567_v29 = vld [vmem:[#allocation2 + $0x50] sm:$0xff] }
 0x198   :  { %v446_v31 = vsub.f32 0.0, %v1707_v24 }
 0x199   :  { %v147_v32 = vand.u32 2147483647, %v144_v30  ;;  %vm156_vm3 = vcmp.ge.f32.partialorder %v144_v30, 0.0  ;;  %v151_v40 = vmax.f32 %v144_v30, 0.0 }
 0x19b   :  { %v148_v33 = vsub.f32 0.0, %v147_v32 }
 0x19d   :  { %v149_v34 = vmul.f32 1.442695, %v148_v33 }
 0x19f   :  { %1567 = vpow2.f32 %v149_v34 }
 0x1a9   :  { %v1568_v35 = vpop.eup %1567 }
 0x1aa   :  { %v152_v36 = vadd.f32 1.0, %v1568_v35  ;;  %v157_v37 = vsel %vm156_vm3, 1.0, %v1568_v35 }
 0x1ac   :  { %1569 = vlog2.f32 %v152_v36 }
 0x1ad   :  { %1571 = vrcp.f32 %v152_v36 }
 0x1b6   :  { %v1570_v38 = vpop.eup %1569 }
 0x1b7   :  { %v1572_v39 = vpop.eup %1571  ;;  %v154_v41 = vmul.f32 0.6931472, %v1570_v38 }
 0x1b8   :  { %v1716_v42 = vmul.f32 %v1572_v39, %v157_v37  ;;  %v1425_v37 = vld [vmem:[#allocation2 + $0x58] ss:$0 sm:$0xff] }
 0x1b9   :  { %v155_v43 = vadd.f32 %v154_v41, %v151_v40 }
 0x1bb   :  { %v160_v44 = vsub.f32 0.0, %v155_v43  ;;  %v1419_v43 = vld [vmem:[#allocation2 + $0x30] ss:$0 sm:$0xff] }
 0x1bd   :  { %1476 = vmatmul.mubr.msk.f32.vlgmr.msra.gmra.mrb[0].mxu1 %vm73_vm2, %v160_v44 }
 0x1be   :  { %1485 = vmatprep.mubr.msk.f32.mxu1 %vm1647_vm0, %v1646_v4  ;;  %1484 = vmatpush3.msra.mxu1 %v367_v18 }
 0x1bf   :  { %1493 = vmatprep.subr.mxu1 %v1646_v4 }
 0x290   :  { %v234_v46 = vpop.f32.mrb[0].mxu1 }
 0x291   :  { %v235_v47 = vadd.f32 %v234_v46, %v163_v45  ;;  %v1477_v48 = vpop.f32.mrb[1].mxu1 }
 0x293   :  { %v238_v49 = vand.u32 2147483647, %v235_v47  ;;  %vm247_vm4 = vcmp.ge.f32.partialorder %v235_v47, 0.0  ;;  %v242_v57 = vmax.f32 %v235_v47, 0.0 }
 0x295   :  { %v239_v50 = vsub.f32 0.0, %v238_v49 }
 0x297   :  { %v240_v51 = vmul.f32 1.442695, %v239_v50 }
 0x299   :  { %1573 = vpow2.f32 %v240_v51 }
 0x2a3   :  { %v1574_v52 = vpop.eup %1573 }
 0x2a4   :  { %v248_v53 = vsel %vm247_vm4, 1.0, %v1574_v52  ;;  %v243_v54 = vadd.f32 1.0, %v1574_v52 }
 0x2a6   :  { %1575 = vlog2.f32 %v243_v54 }
 0x2a7   :  { %1577 = vrcp.f32 %v243_v54 }
 0x2b0   :  { %v1576_v55 = vpop.eup %1575 }
 0x2b1   :  { %v1578_v56 = vpop.eup %1577  ;;  %v245_v58 = vmul.f32 0.6931472, %v1576_v55 }
 0x2b2   :  { %v250_v59 = vmul.f32 %v1578_v56, %v248_v53 }
 0x2b3   :  { %v246_v60 = vadd.f32 %v245_v58, %v242_v57 }
 0x2b4   :  { %v284_v20 = vsub.f32 0.0, %v250_v59  ;;  %v1423_v59 = vld [vmem:[#allocation2 + $0x98] ss:$0 sm:$0xff] }
 0x2b5   :  { %v251_v62 = vsub.f32 0.0, %v246_v60  ;;  %v1424_v60 = vld [vmem:[#allocation2 + $0xa0] ss:$0 sm:$0xff] }
 0x2b7   :  { %v257_v63 = vmul.f32 %v1418_v61, %v251_v62 }
 0x2b9   :  { %v258_v2 = vsel %vm73_vm2, %v257_v63, 0.0 }
 0x2ba   :  { %259 = vadd.xlane.f32.xlu1 %v258_v2 }
 0x347   :  { %v260_v5 = vpop.xlane.xlu1 %259 }
 0x348   :  { %v261_v6 = vadd.f32 %v260_v5, %v1699_v13 }
 0x34a   :  { %v262_v7 = vand.u32 2147483647, %v261_v6  ;;  %vm266_vm5 = vcmp.ge.f32.partialorder %v261_v6, 0.0 }
 0x34c   :  { %v263_v8 = vsub.f32 0.0, %v262_v7 }
 0x34e   :  { %v264_v9 = vmul.f32 1.442695, %v263_v8 }
 0x350   :  { %1579 = vpow2.f32 %v264_v9 }
 0x35a   :  { %v1580_v10 = vpop.eup %1579 }
 0x35b   :  { %v268_v11 = vadd.f32 1.0, %v1580_v10  ;;  %v267_v14 = vsel %vm266_vm5, 1.0, %v1580_v10 }
 0x35d   :  { %1581 = vrcp.f32 %v268_v11  ;;  %v662_v11 = vld [vmem:[#allocation2 + $0x80] sm:$0xff] }
 0x367   :  { %v1582_v12 = vpop.eup %1581 }
 0x368   :  { %v270_v15 = vmul.f32 %v1582_v12, %v267_v14 }
 0x36a   :  { %v271_v16 = vsub.f32 0.0, %v270_v15 }
 0x36c   :  { %274 = vperm.xlu0 %1553, %v271_v16  }
 0x370   :  { %574 = vrot.lane.b32.xlu0 %v1709_v25, %s1651_s25  ;;  %v365_v25 = vsub.f32 0.0, %v1716_v42 }
 0x371   :  { %1554 = vset.pattern.permute.xlu0 %v1644_v0 }
 0x3eb   :  { %v275_v19 = vpop.permute.xlu0 %274 }
 0x3ec   :  { %v277_v21 = vmul.f32 %v1418_v61, %v275_v19  ;;  %v283_v45 = vmul.f32 %v1419_v43, %v275_v19  ;;  %v1008_v43 = vld [vmem:[#allocation2 + $0x70] sm:$0xff] }
 0x3ee   :  { %v285_v22 = vmul.f32 %v284_v20, %v277_v21 }
 0x3ef   :  { %v575_v30 = vpop.permute.xlu0 %574 }
 0x3f0   :  { %1481 = vmatmul.mubr.msk.f32.vlgmr.msra.gmra.mrb[2].mxu0 %vm73_vm2, %v285_v22 }
 0x3f1   :  { %1490 = vmatprep.mubr.msk.f32.mxu0 %vm1647_vm0, %v1646_v4  ;;  %1489 = vmatpush3.msra.mxu0 %v448_v23 }
 0x3f2   :  { %1498 = vmatprep.subr.mxu0 %v1646_v4 }
 0x4c3   :  { %v356_v26 = vpop.f32.mrb[2].mxu0 }
 0x4c4   :  { %v366_v27 = vmul.f32 %v365_v25, %v356_v26  ;;  %361 = vrot.lane.b32.xlu0 %v356_v26, %s1648_s0  ;;  %v1482_v28 = vpop.f32.mrb[3].mxu0  ;;  %v1429_v26 = vld [vmem:[#allocation2 + $0xb0] ss:$0 sm:$0xff] }
 0x4c5   :  { %v1428_v28 = vld [vmem:[#allocation2 + $0xa8] ss:$0 sm:$0xff] }
 0x4c6   :  { %1486 = vmatmul.mubr.msk.f32.vlgmr.msra.gmra.mrb[2].mxu1 %vm73_vm2, %v366_v27 }
 0x4c7   :  { %1494 = vmatpush3.msra.mxu1 %v567_v29  ;;  %1495 = vmatprep.mubr.msk.f32.mxu1 %vm1647_vm0, %v1646_v4 }
 0x4c8   :  { %1503 = vmatprep.subr.mxu1 %v1646_v4 }
 0x4ca   :  { %1496 = vmatmul.mubr.msk.f32.vlgmr.msra.gmra.mrb[4].mxu1 %vm73_vm2, %v575_v30 }
 0x4cb   :  { %1505 = vmatprep.mubr.msk.f32.mxu1 %vm1647_vm0, %v1646_v4 }
 0x536   :  { %v362_v44 = vpop.permute.xlu0 %361 }
 0x537   :  { %v364_v47 = vadd.f32 %v362_v44, %v283_v45  ;;  %v882_v44 = vld [vmem:[#allocation2 + $0x88] sm:$0xff] }
 0x599   :  { %v437_v32 = vpop.f32.mrb[2].mxu1 }
 0x59a   :  { %v447_v33 = vmul.f32 %v446_v31, %v437_v32  ;;  %442 = vrot.lane.b32.xlu0 %v437_v32, %s1648_s0  ;;  %v1487_v34 = vpop.f32.mrb[3].mxu1 }
 0x59b   :  { %v1430_v34 = vld [vmem:[#allocation2 + $0x68] ss:$0 sm:$0xff] }
 0x59c   :  { %1491 = vmatmul.mubr.msk.f32.vlgmr.msra.gmra.mrb[4].mxu0 %vm73_vm2, %v447_v33 }
 0x59d   :  { %v644_v35 = vpop.f32.mrb[4].mxu1  ;;  %1500 = vmatprep.mubr.msk.f32.mxu0 %vm1647_vm0, %v1646_v4  ;;  %1499 = vmatpush3.msra.mxu0 %v662_v11 }
 0x59e   :  { %523 = vrot.lane.b32.xlu0 %v1699_v13, %s1652_s26  ;;  %v1497_v36 = vpop.f32.mrb[5].mxu1  ;;  %v1746_v38 = vadd.f32 %v1425_v37, %v644_v35  ;;  %1508 = vmatprep.subr.mxu0 %v1646_v4 }
 0x5a0   :  { %v649_v24 = vand.u32 2147483647, %v1746_v38  ;;  %v648_v56 = vmax.f32 %v1746_v38, 0.0 }
 0x5a2   :  { %v650_v39 = vsub.f32 0.0, %v649_v24 }
 0x5a4   :  { %v651_v40 = vmul.f32 1.442695, %v650_v39 }
 0x5a6   :  { %1583 = vpow2.f32 %v651_v40 }
 0x5b0   :  { %v1584_v41 = vpop.eup %1583 }
 0x5b1   :  { %v653_v42 = vadd.f32 1.0, %v1584_v41 }
 0x5b3   :  { %1585 = vlog2.f32 %v653_v42 }
 0x5bd   :  { %v1586_v54 = vpop.eup %1585 }
 0x5be   :  { %v655_v55 = vmul.f32 0.6931472, %v1586_v54 }
 0x5c0   :  { %v1757_v57 = vadd.f32 %v655_v55, %v648_v56 }
 0x60c   :  { %v443_v46 = vpop.permute.xlu0 %442 }
 0x60d   :  { %v445_v48 = vadd.f32 %v443_v46, %v364_v47 }
 0x610   :  { %v1751_v52 = vpop.permute.xlu0 %523 }
 0x66f   :  { %v518_v49 = vpop.f32.mrb[4].mxu0 }
 0x670   :  { %v1749_v50 = vadd.f32 %v518_v49, %v445_v48  ;;  %v1492_v51 = vpop.f32.mrb[5].mxu0 }
 0x672   :  { %v526_v53 = vmul.f32 %v1751_v52, %v1749_v50 }
 0x674   :  { %531 = vperm.xlu0 %1554, %v526_v53  }
 0x678   :  { %1555 = vset.pattern.permute.xlu0 %v1645_v1 }
 0x679   :  { %540 = vperm.xlu0 %1555, %v526_v53  }
 0x67d   :  { %658 = vrot.lane.b32.xlu0 %v1757_v57, %s1653_s27 }
 0x67e   :  { %1556 = vset.pattern.permute.xlu0 %v1644_v0 }
 0x6f3   :  { %v532_v58 = vpop.permute.xlu0 %531 }
 0x6f4   :  { %v538_v62 = vmul.f32 %v1423_v59, %v532_v58 }
 0x6f8   :  { %v541_v61 = vpop.permute.xlu0 %540 }
 0x6f9   :  { %v547_v63 = vmul.f32 %v1424_v60, %v541_v61 }
 0x6fb   :  { %v548_v2 = vadd.f32 %v547_v63, %v538_v62 }
 0x6fc   :  { %v659_v22 = vpop.permute.xlu0 %658 }
 0x6fd   :  { %550 = vrot.lane.b32.xlu1 %v548_v2, %s1653_s27 }
 0x701   :  { %744 = vrot.lane.b32.xlu1 %v1746_v38, %s1648_s0 }
 0x76f   :  { %v551_v3 = vpop.permute.xlu1 %550 }
 0x770   :  { %v553_v5 = vadd.f32 %v551_v3, %v1699_v13  ;;  %v788_v13 = vld [vmem:[#allocation2 + $0x60] sm:$0xff] }
 0x771   :  { %1504 = vmatpush3.msra.mxu1 %v788_v13 }
 0x772   :  { %v554_v6 = vand.u32 2147483647, %v553_v5  ;;  %vm563_vm6 = vcmp.ge.f32.partialorder %v553_v5, 0.0  ;;  %1513 = vmatprep.subr.mxu1 %v1646_v4  ;;  %v558_v18 = vmax.f32 %v553_v5, 0.0 }
 0x773   :  { %v745_v7 = vpop.permute.xlu1 %744 }
 0x774   :  { %v555_v8 = vsub.f32 0.0, %v554_v6  ;;  %v747_v9 = vmul.f32 %v745_v7, %v1749_v50 }
 0x776   :  { %v556_v10 = vmul.f32 1.442695, %v555_v8  ;;  %761 = vperm.xlu1 %1557, %v747_v9  }
 0x778   :  { %1587 = vpow2.f32 %v556_v10 }
 0x77a   :  { %1558 = vset.pattern.permute.xlu1 %v1644_v0 }
 0x782   :  { %v1588_v12 = vpop.eup %1587 }
 0x783   :  { %v559_v14 = vadd.f32 1.0, %v1588_v12  ;;  %v564_v15 = vsel %vm563_vm6, 1.0, %v1588_v12 }
 0x785   :  { %1589 = vlog2.f32 %v559_v14 }
 0x786   :  { %1591 = vrcp.f32 %v559_v14  ;;  %v1435_v14 = vld [vmem:[#allocation2 + $0x78] ss:$0 sm:$0xff] }
 0x78f   :  { %v1590_v16 = vpop.eup %1589 }
 0x790   :  { %v1592_v17 = vpop.eup %1591  ;;  %v561_v19 = vmul.f32 0.6931472, %v1590_v16 }
 0x791   :  { %v1768_v20 = vmul.f32 %v1592_v17, %v564_v15 }
 0x792   :  { %v562_v21 = vadd.f32 %v561_v19, %v558_v18 }
 0x794   :  { %v661_v23 = vmul.f32 %v659_v22, %v562_v21 }
 0x796   :  { %664 = vrot.lane.b32.xlu0 %v661_v23, %s1654_s28 }
 0x79a   :  { %794 = vrot.lane.b32.xlu0 %v1757_v57, %s1655_s29 }
 0x79e   :  { %752 = vperm.xlu0 %1556, %v747_v9  }
 0x7a2   :  { %1559 = vset.pattern.permute.xlu0 %v1645_v1 }
 0x7f5   :  { %v762_v27 = vpop.permute.xlu1 %761 }
 0x7f6   :  { %v768_v30 = vmul.f32 %v1429_v26, %v762_v27  ;;  %v1434_v27 = vld [vmem:[#allocation2 + $0xc0] ss:$0 sm:$0xff] }
 0x808   :  { %v665_v0 = vpop.permute.xlu0 %664 }
 0x809   :  { %1501 = vmatmul.mubr.msk.f32.vlgmr.msra.gmra.mrb[6].mxu0 %vm73_vm2, %v665_v0 }
 0x80a   :  { %1510 = vmatprep.mubr.msk.f32.mxu0 %vm1647_vm0, %v1646_v4  ;;  %1509 = vmatpush3.msra.mxu0 %v882_v44 }
 0x80b   :  { %1518 = vmatprep.subr.mxu0 %v1646_v4 }
 0x80c   :  { %v795_v25 = vpop.permute.xlu0 %794 }
 0x80d   :  { %1506 = vmatmul.mubr.msk.f32.vlgmr.msra.gmra.mrb[6].mxu1 %vm73_vm2, %v795_v25 }
 0x80e   :  { %1515 = vmatprep.mubr.msk.f32.mxu1 %vm1647_vm0, %v1646_v4  ;;  %1514 = vmatpush3.msra.mxu1 %v1008_v43 }
 0x80f   :  { %1523 = vmatprep.subr.mxu1 %v1646_v4 }
 0x81d   :  { %v753_v29 = vpop.permute.xlu0 %752 }
 0x81e   :  { %v759_v31 = vmul.f32 %v1428_v28, %v753_v29  ;;  %v1433_v29 = vld [vmem:[#allocation2 + $0xb8] ss:$0 sm:$0xff] }
 0x820   :  { %v769_v32 = vadd.f32 %v768_v30, %v759_v31 }
 0x822   :  { %771 = vrot.lane.b32.xlu0 %v769_v32, %s1656_s30 }
 0x894   :  { %v772_v53 = vpop.permute.xlu0 %771 }
 0x8dc   :  { %v734_v1 = vpop.f32.mrb[6].mxu0 }
 0x8dd   :  { %739 = vrot.lane.b32.xlu1 %v734_v1, %s1656_s30  ;;  %v1502_v33 = vpop.f32.mrb[7].mxu0 }
 0x8e0   :  { %v864_v35 = vpop.f32.mrb[6].mxu1 }
 0x8e1   :  { %v1782_v36 = vadd.f32 %v1430_v34, %v864_v35  ;;  %v1507_v37 = vpop.f32.mrb[7].mxu1  ;;  %v1437_v35 = vld [vmem:[#allocation2 + $0x90] ss:$0 sm:$0xff] }
 0x8e3   :  { %v869_v24 = vand.u32 2147483647, %v1782_v36  ;;  %v868_v46 = vmax.f32 %v1782_v36, 0.0 }
 0x8e5   :  { %v870_v39 = vsub.f32 0.0, %v869_v24 }
 0x8e7   :  { %v871_v40 = vmul.f32 1.442695, %v870_v39 }
 0x8e9   :  { %1593 = vpow2.f32 %v871_v40 }
 0x8f3   :  { %v1594_v41 = vpop.eup %1593 }
 0x8f4   :  { %v873_v42 = vadd.f32 1.0, %v1594_v41 }
 0x8f6   :  { %1595 = vlog2.f32 %v873_v42 }
 0x900   :  { %v1596_v45 = vpop.eup %1595 }
 0x901   :  { %v875_v47 = vmul.f32 0.6931472, %v1596_v45 }
 0x903   :  { %v1788_v48 = vadd.f32 %v875_v47, %v868_v46 }
 0x905   :  { %878 = vrot.lane.b32.xlu1 %v1788_v48, %s1656_s30 }
 0x909   :  { %1014 = vrot.lane.b32.xlu1 %v1788_v48, %s1655_s29 }
 0x94f   :  { %v740_v49 = vpop.permute.xlu1 %739 }
 0x950   :  { %v742_v51 = vadd.f32 %v740_v49, %v1746_v38 }
 0x952   :  { %v774_v54 = vadd.f32 %v772_v53, %v742_v51 }
 0x954   :  { %v775_v55 = vand.u32 2147483647, %v774_v54  ;;  %vm784_vm7 = vcmp.ge.f32.partialorder %v774_v54, 0.0  ;;  %v779_v5 = vmax.f32 %v774_v54, 0.0 }
 0x956   :  { %v776_v56 = vsub.f32 0.0, %v775_v55 }
 0x958   :  { %v777_v58 = vmul.f32 1.442695, %v776_v56 }
 0x95a   :  { %1597 = vpow2.f32 %v777_v58 }
 0x964   :  { %v1598_v59 = vpop.eup %1597 }
 0x965   :  { %v780_v60 = vadd.f32 1.0, %v1598_v59  ;;  %v785_v61 = vsel %vm784_vm7, 1.0, %v1598_v59 }
 0x967   :  { %1599 = vlog2.f32 %v780_v60 }
 0x968   :  { %1601 = vrcp.f32 %v780_v60 }
 0x971   :  { %v1600_v62 = vpop.eup %1599 }
 0x972   :  { %v1602_v63 = vpop.eup %1601  ;;  %v782_v2 = vmul.f32 0.6931472, %v1600_v62 }
 0x973   :  { %v1795_v3 = vmul.f32 %v1602_v63, %v785_v61  ;;  %v1438_v61 = vld [vmem:[#allocation2 + $0xc8] ss:$0 sm:$0xff] }
 0x974   :  { %v783_v6 = vadd.f32 %v782_v2, %v779_v5 }
 0x977   :  { %v879_v7 = vpop.permute.xlu1 %878 }
 0x978   :  { %v881_v8 = vmul.f32 %v879_v7, %v783_v6  ;;  %v1658_v7 = vmov 10  }
 0x97a   :  { %884 = vrot.lane.b32.xlu0 %v881_v8, %s1657_s3 }
 0x97b   :  { %v1015_v9 = vpop.permute.xlu1 %1014 }
 0x97c   :  { %1516 = vmatmul.mubr.msk.f32.vlgmr.msra.gmra.mrb[8].mxu1 %vm73_vm2, %v1015_v9 }
 0x97d   :  { %1525 = vmatprep.mubr.msk.f32.mxu1 %vm1647_vm0, %v1646_v4 }
 0x97e   :  { %964 = vrot.lane.b32.xlu0 %v1782_v36, %s1648_s0 }
 0x9ec   :  { %v885_v10 = vpop.permute.xlu0 %884 }
 0x9ed   :  { %1511 = vmatmul.mubr.msk.f32.vlgmr.msra.gmra.mrb[8].mxu0 %vm73_vm2, %v885_v10 }
 0x9ee   :  { %1520 = vmatprep.mubr.msk.f32.mxu0 %vm1647_vm0, %v1646_v4 }
 0x9f0   :  { %v965_v11 = vpop.permute.xlu0 %964 }
 0x9f1   :  { %v967_v12 = vmul.f32 %v965_v11, %v1749_v50 }
 0x9f3   :  { %981 = vperm.xlu0 %1559, %v967_v12   ;;  %972 = vperm.xlu1 %1558, %v967_v12  }
 0x9f7   :  { %1560 = vset.pattern.permute.xlu0 %v1658_v7 }
 0xa4f   :  { %v1084_v15 = vpop.f32.mrb[8].mxu1 }
 0xa50   :  { %v1807_v13 = vadd.f32 %v1435_v14, %v1084_v15  ;;  %v1517_v16 = vpop.f32.mrb[9].mxu1 }
 0xa52   :  { %v1089_v17 = vand.u32 2147483647, %v1807_v13  ;;  %v1088_v0 = vmax.f32 %v1807_v13, 0.0 }
 0xa54   :  { %v1090_v18 = vsub.f32 0.0, %v1089_v17 }
 0xa56   :  { %v1091_v19 = vmul.f32 1.442695, %v1090_v18 }
 0xa58   :  { %1603 = vpow2.f32 %v1091_v19  ;;  %v1159_v19 = vld [vmem:[#allocation2 + $0xd0] sm:$0xff] }
 0xa59   :  { %1519 = vmatpush3.msra.mxu0 %v1159_v19 }
 0xa5a   :  { %1528 = vmatprep.subr.mxu0 %v1646_v4 }
 0xa62   :  { %v1604_v21 = vpop.eup %1603 }
 0xa63   :  { %v1093_v22 = vadd.f32 1.0, %v1604_v21 }
 0xa65   :  { %1605 = vlog2.f32 %v1093_v22 }
 0xa6f   :  { %v1606_v23 = vpop.eup %1605 }
 0xa70   :  { %v1095_v25 = vmul.f32 0.6931472, %v1606_v23 }
 0xa72   :  { %v1811_v26 = vadd.f32 %v1095_v25, %v1088_v0  ;;  %v982_v28 = vpop.permute.xlu0 %981  ;;  %v973_v30 = vpop.permute.xlu1 %972  ;;  %v1245_v25 = vld [vmem:[#allocation2 + $0xd8] sm:$0xff] }
 0xa73   :  { %v988_v31 = vmul.f32 %v1434_v27, %v982_v28  ;;  %v979_v32 = vmul.f32 %v1433_v29, %v973_v30  ;;  %1524 = vmatpush3.msra.mxu1 %v1245_v25 }
 0xa74   :  { %1100 = vrot.lane.b32.xlu0 %v1811_v26, %s1656_s30 }
 0xa75   :  { %v989_v34 = vadd.f32 %v988_v31, %v979_v32 }
 0xa78   :  { %1122 = vrot.lane.b32.xlu0 %v1807_v13, %s1648_s0 }
 0xac0   :  { %v954_v1 = vpop.f32.mrb[8].mxu0 }
 0xac1   :  { %959 = vrot.lane.b32.xlu1 %v954_v1, %s1656_s30  ;;  %v1512_v33 = vpop.f32.mrb[9].mxu0 }
 0xac5   :  { %991 = vrot.lane.b32.xlu1 %v989_v34, %s1656_s30 }
 0xac9   :  { %1109 = vrot.lane.b32.xlu1 %v1437_v35, %s1656_s30 }
 0xae6   :  { %v1101_v54 = vpop.permute.xlu0 %1100 }
 0xaea   :  { %v1822_v59 = vpop.permute.xlu0 %1122 }
 0xaeb   :  { %v1125_v60 = vmul.f32 %v1822_v59, %v1749_v50 }
 0xaed   :  { %v1130_v62 = vmul.f32 %v1438_v61, %v1125_v60 }
 0xaef   :  { %v1132_v63 = vsel %vm1131_vm9, %v1130_v62, 0.0 }
 0xb33   :  { %v960_v37 = vpop.permute.xlu1 %959 }
 0xb34   :  { %v962_v24 = vadd.f32 %v960_v37, %v1782_v36 }
 0xb37   :  { %v992_v39 = vpop.permute.xlu1 %991 }
 0xb38   :  { %v994_v40 = vadd.f32 %v992_v39, %v962_v24 }
 0xb3a   :  { %v995_v41 = vand.u32 2147483647, %v994_v40  ;;  %vm1004_vm8 = vcmp.ge.f32.partialorder %v994_v40, 0.0  ;;  %v999_v49 = vmax.f32 %v994_v40, 0.0 }
 0xb3b   :  { %v1110_v55 = vpop.permute.xlu1 %1109 }
 0xb3c   :  { %v996_v42 = vsub.f32 0.0, %v995_v41 }
 0xb3e   :  { %v997_v43 = vmul.f32 1.442695, %v996_v42 }
 0xb40   :  { %1607 = vpow2.f32 %v997_v43 }
 0xb4a   :  { %v1608_v44 = vpop.eup %1607 }
 0xb4b   :  { %v1000_v45 = vadd.f32 1.0, %v1608_v44  ;;  %v1005_v46 = vsel %vm1004_vm8, 1.0, %v1608_v44 }
 0xb4d   :  { %1609 = vlog2.f32 %v1000_v45 }
 0xb4e   :  { %1611 = vrcp.f32 %v1000_v45 }
 0xb57   :  { %v1610_v47 = vpop.eup %1609 }
 0xb58   :  { %v1002_v51 = vmul.f32 0.6931472, %v1610_v47  ;;  %v1612_v2 = vpop.eup %1611 }
 0xb59   :  { %v1007_v5 = vmul.f32 %v1612_v2, %v1005_v46 }
 0xb5a   :  { %v1003_v53 = vadd.f32 %v1002_v51, %v999_v49 }
 0xb5c   :  { %v1103_v56 = vmul.f32 %v1101_v54, %v1003_v53 }
 0xb5e   :  { %v1112_v58 = vmul.f32 %v1110_v55, %v1103_v56 }
 0xb60   :  { %1114 = vrot.lane.b32.xlu1 %v1112_v58, %s1657_s3 }
 0xb84   :  { %1133 = vadd.xlane.f32.xlu1 %v1132_v63 }
 0xb95   :  { %1155 = vrot.lane.b32.xlu1 %v1007_v5, %s1657_s3 }
 0xb99   :  { %1241 = vrot.lane.b32.xlu1 %v1795_v3, %s1657_s3 }
 0xb9d   :  { %1327 = vrot.lane.b32.xlu1 %v1768_v20, %s1654_s28 }
 0xbd2   :  { %v1115_v6 = vpop.permute.xlu1 %1114 }
 0xbd3   :  { %v1117_v50 = vsel %vm73_vm2, %v1115_v6, 0.0 }
 0xbd4   :  { %1118 = vadd.xlane.f32.xlu0 %v1117_v50 }
 0xc11   :  { %v1134_v10 = vpop.xlane.xlu1 %1133 }
 0xc15   :  { %v1156_v23 = vpop.permute.xlu1 %1155 }
 0xc19   :  { %v1242_v31 = vpop.permute.xlu1 %1241 }
 0xc61   :  { %v1119_v8 = vpop.xlane.xlu0 %1118 }
 0xc62   :  { %v1120_v9 = vadd.f32 %v1119_v8, %v1807_v13 }
 0xc64   :  { %v1135_v11 = vadd.f32 %v1134_v10, %v1120_v9 }
 0xc66   :  { %v1136_v12 = vand.u32 2147483647, %v1135_v11  ;;  %vm1140_vm10 = vcmp.ge.f32.partialorder %v1135_v11, 0.0 }
 0xc68   :  { %v1137_v14 = vsub.f32 0.0, %v1136_v12 }
 0xc6a   :  { %v1138_v15 = vmul.f32 1.442695, %v1137_v14 }
 0xc6c   :  { %1613 = vpow2.f32 %v1138_v15 }
 0xc76   :  { %v1614_v16 = vpop.eup %1613 }
 0xc77   :  { %v1142_v3 = vadd.f32 1.0, %v1614_v16  ;;  %v1141_v17 = vsel %vm1140_vm10, 1.0, %v1614_v16 }
 0xc79   :  { %1615 = vrcp.f32 %v1142_v3 }
 0xc83   :  { %v1616_v20 = vpop.eup %1615 }
 0xc84   :  { %v1144_v18 = vmul.f32 %v1616_v20, %v1141_v17 }
 0xc86   :  { %1147 = vperm.xlu0 %1560, %v1144_v18  }
 0xd05   :  { %v1148_v21 = vpop.permute.xlu0 %1147 }
 0xd06   :  { %v1150_v13 = vmul.f32 %v1437_v35, %v1148_v21  ;;  %v1328_v35 = vpop.permute.xlu1 %1327 }
 0xd08   :  { %v1151_v22 = vmul.f32 %v1150_v13, %v1811_v26  ;;  %v1331_v26 = vld [vmem:[#allocation2 + $0xe0] sm:$0xff] }
 0xd0a   :  { %v1158_v0 = vmul.f32 %v1156_v23, %v1151_v22 }
 0xd0c   :  { %1521 = vmatmul.mubr.msk.f32.vlgmr.msra.gmra.mrb[10].mxu0 %vm73_vm2, %v1158_v0 }
 0xd0d   :  { %1530 = vmatprep.mubr.msk.f32.mxu0 %vm1647_vm0, %v1646_v4  ;;  %1529 = vmatpush3.msra.mxu0 %v1331_v26 }
 0xddf   :  { %v1229_v27 = vpop.f32.mrb[10].mxu0 }
 0xde0   :  { %v1233_v28 = vmul.f32 %v1229_v27, %v1788_v48  ;;  %v1234_v29 = vmul.f32 %v1229_v27, %v1782_v36  ;;  %v1522_v30 = vpop.f32.mrb[11].mxu0  ;;  %v1152_v36 = vmul.f32 %v1438_v61, %v1148_v21 }
 0xde2   :  { %v1244_v32 = vmul.f32 %v1242_v31, %v1233_v28  ;;  %1236 = vrot.lane.b32.xlu1 %v1234_v29, %s1648_s0  ;;  %v1153_v24 = vmul.f32 %v1152_v36, %v1822_v59 }
 0xde4   :  { %1526 = vmatmul.mubr.msk.f32.vlgmr.msra.gmra.mrb[10].mxu1 %vm73_vm2, %v1244_v32 }
 0xe54   :  { %v1237_v48 = vpop.permute.xlu1 %1236 }
 0xe55   :  { %v1239_v40 = vadd.f32 %v1237_v48, %v1153_v24 }
 0xeb7   :  { %v1315_v1 = vpop.f32.mrb[10].mxu1 }
 0xeb8   :  { %v1319_v33 = vmul.f32 %v1315_v1, %v1757_v57  ;;  %v1320_v4 = vmul.f32 %v1315_v1, %v1746_v38  ;;  %v1527_v34 = vpop.f32.mrb[11].mxu1 }
 0xeba   :  { %v1330_v37 = vmul.f32 %v1328_v35, %v1319_v33  ;;  %1322 = vrot.lane.b32.xlu1 %v1320_v4, %s1648_s0 }
 0xebc   :  { %1531 = vmatmul.mubr.msk.f32.vlgmr.msra.gmra.mrb[12].mxu0 %vm73_vm2, %v1330_v37 }
 0xf2c   :  { %v1323_v39 = vpop.permute.xlu1 %1322 }
 0xf2d   :  { %v1325_v42 = vadd.f32 %v1323_v39, %v1239_v40 }
 0xf8f   :  { %v1401_v41 = vpop.f32.mrb[12].mxu0 }
 0xf90   :  { %v1405_v43 = vmul.f32 %v1401_v41, %v1751_v52  ;;  %v1532_v57 = vpop.f32.mrb[13].mxu0 }
 0xf92   :  { %v1406_v44 = vadd.f32 %v1405_v43, %v1325_v42 }
 0xf94   :  { %1407 = vst.msk [vmem:[%s1855_s2] sm:$0xff] %vm1131_vm9, %v1406_v44 }
 0xf95   :  { %1412 = vsyncpa [#allocation3], 1 }

</bundles_post_ra>
